<compile_context>
chip_gen: v5e
topology: v5e:2x2
jax: 0.10.0
libtpu: 0.0.40
codegen_flags: <defaults>
</compile_context>

<pallas_src>
import functools
import math

import jax
import jax.numpy as jnp
from jax.experimental import pallas as pl
from jax.experimental.pallas import tpu as pltpu


# ----------------------------------------------------------------------------
# Small helpers
# ----------------------------------------------------------------------------
_SQRT_2_OVER_PI = math.sqrt(2.0 / math.pi)
_GELU_C = 0.044715


def _gelu_tanh(x):
    # tanh-form GELU (EUP) — ~1e-3 max deviation from torch's exact erf GELU.
    return 0.5 * x * (1.0 + jnp.tanh(_SQRT_2_OVER_PI * (x + _GELU_C * x * x * x)))


def _layernorm(x, gamma, beta, eps=1e-5):
    # torch.nn.LayerNorm over the last dim (biased variance), f32.
    mu = jnp.mean(x, axis=-1, keepdims=True)
    var = jnp.mean(jnp.square(x - mu), axis=-1, keepdims=True)
    return (x - mu) * jax.lax.rsqrt(var + eps) * gamma + beta


@functools.lru_cache(maxsize=1)
def _tpu_generation():
    try:
        kind = jax.devices()[0].device_kind.lower()
    except Exception:
        return "other"
    if "v7" in kind or "tpu7" in kind or "7x" in kind:
        return "v7"
    if "v6" in kind:
        return "v6"
    if "v5" in kind:
        return "v5"
    return "other"


def _resident_spec(shape, index_map):
    """BlockSpec for a constant-index (grid-invariant) weight: request
    single-buffering so the resident copy isn't duplicated; fall back to the
    default spec if this Pallas version doesn't take pipeline_mode."""
    if hasattr(pl, "Buffered"):
        try:
            return pl.BlockSpec(shape, index_map, pipeline_mode=pl.Buffered(1))
        except TypeError:
            pass
    return pl.BlockSpec(shape, index_map)


# ----------------------------------------------------------------------------
# Kernel 1: patch embedding (Conv2d stride=kernel=P == patches @ W + b),
# row-tiled so DMA pipelines with the MXU.  K is lane-padded to 128 on host.
# ----------------------------------------------------------------------------
def _patch_embed_kernel(x_ref, w_ref, b_ref, o_ref):
    o_ref[...] = (
        jnp.dot(x_ref[...], w_ref[...], preferred_element_type=jnp.float32)
        + b_ref[...]
    )


def patch_embed(patches_bf16, w_bf16, b_f32, *, gen):
    M, K = patches_bf16.shape
    _, D = w_bf16.shape
    tm = 512 if gen == "v5" else 256      # v5e: bigger tiles toward HBM roofline
    tm = min(tm, M)
    if gen == "v7" and pl.cdiv(M, tm) < 2 and M >= 16:
        tm = ((M // 2 + 7) // 8) * 8      # keep >=2 parallel steps for 2 TCs
    return pl.pallas_call(
        _patch_embed_kernel,
        out_shape=jax.ShapeDtypeStruct((M, D), jnp.float32),
        grid=(pl.cdiv(M, tm),),
        in_specs=[
            pl.BlockSpec((tm, K), lambda i: (i, 0)),
            _resident_spec((K, D), lambda i: (0, 0)),
            _resident_spec((1, D), lambda i: (0, 0)),
        ],
        out_specs=pl.BlockSpec((tm, D), lambda i: (i, 0)),
        compiler_params=pltpu.CompilerParams(dimension_semantics=("parallel",)),
    )(patches_bf16, w_bf16, b_f32.reshape(1, D))


# ----------------------------------------------------------------------------
# Kernel 2: ALL gMLP blocks fused.  grid = (batch_tiles, num_layers).
# Residual stream lives in VMEM scratch across the layer axis; per-layer
# weights are selected by the layer grid index (double-buffered prefetch).
# ----------------------------------------------------------------------------
def _gmlp_stack_kernel(
    x_ref,                         # (rows, D) f32  — used only at layer 0
    g1_ref, be1_ref,               # LayerNorm(d_model)        f32 (1, D)
    w1_ref, b1_ref,                # channel_projection_1      bf16 (D, 2F), f32 (1, 2F)
    gv_ref, bev_ref,               # SGU LayerNorm(d_ffn)      f32 (1, F)
    ws_ref, bs_ref,                # SGU spatial proj (block-diag) bf16 (rows, rows), f32 (rows, 1)
    w2_ref, b2_ref,                # channel_projection_2      bf16 (F, D), f32 (1, D)
    o_ref,                         # (rows, D) f32 — written at last layer
    h_ref,                         # VMEM scratch (rows, D) f32 residual stream
    *, f, eltwise_bf16,
):
    layer = pl.program_id(1)

    @pl.when(layer == 0)
    def _():
        h_ref[...] = x_ref[...]

    x = h_ref[...]                                        # f32 residual
    xn = _layernorm(x, g1_ref[...], be1_ref[...])

    # Fused channel_projection_1 + GELU (matches F.gelu(proj1(x)) pre-chunk).
    h = (
        jnp.dot(xn.astype(jnp.bfloat16), w1_ref[...],
                preferred_element_type=jnp.float32)
        + b1_ref[...]
    )
    h = _gelu_tanh(h)                                     # (rows, 2F) f32
    u = h[:, :f]                                          # tile-aligned slices
    v = h[:, f:]

    # Spatial Gating Unit: LN -> block-diagonal spatial matmul -> gate.
    vn = _layernorm(v, gv_ref[...], bev_ref[...])
    v_mixed = (
        jnp.dot(ws_ref[...], vn.astype(jnp.bfloat16),
                preferred_element_type=jnp.float32)
        + bs_ref[...]
    )
    if eltwise_bf16:                                      # v6e / v7x: bf16 VALU
        gated = u.astype(jnp.bfloat16) * v_mixed.astype(jnp.bfloat16)
    else:                                                 # v5e: no bf16 VALU
        gated = (u * v_mixed).astype(jnp.bfloat16)

    y = (
        jnp.dot(gated, w2_ref[...], preferred_element_type=jnp.float32)
        + b2_ref[...]
    )
    out = y + x                                           # f32 residual add
    h_ref[...] = out

    @pl.when(layer == pl.num_programs(1) - 1)
    def _():
        o_ref[...] = out


def _pick_batch_tile(batch, n, gen):
    """Largest divisor of batch keeping bt*N near the MXU-friendly row target.
    On v7x, cap bt so the parallel batch axis has >=2 steps (2 TensorCores)."""
    target_rows = 512 if gen == "v5" else 256
    max_bt = batch
    if gen == "v7" and batch >= 2:
        max_bt = batch // 2
    bt = 1
    for cand in range(1, max_bt + 1):
        if batch % cand == 0 and cand * n <= max(target_rows, n):
            bt = cand
    return bt


def gmlp_stack(emb2d, blk, *, bt, n, gen):
    M, D = emb2d.shape
    L, _, F2 = blk["w1"].shape
    F = F2 // 2
    rows = bt * n
    # NOTE: d_ffn should be a multiple of 64 (2*d_ffn of 128) so the u/v split
    # is lane-tile aligned; other values work but force relayout copies.

    # Block-diagonal spatial weight: one (rows, rows) matmul per step instead of
    # bt tiny (N, N) matmuls + concatenate.
    if bt > 1:
        eye = jnp.eye(bt, dtype=jnp.float32)
        ws_bd = jax.vmap(
            lambda w: jnp.kron(eye, w.astype(jnp.float32))
        )(blk["ws"]).astype(jnp.bfloat16)                  # (L, rows, rows)
        bs_t = jnp.tile(blk["bs"], (1, bt, 1))             # (L, rows, 1)
    else:
        ws_bd = blk["ws"]
        bs_t = blk["bs"]

    # VMEM budget (weights are double-buffered across the layer axis).
    bf16, f32 = 2, 4
    weight_bytes = (
        (D * F2 + F * D + rows * rows) * bf16
        + (2 * D + F2 + 2 * F + rows + D) * f32
    )
    est = (
        2 * weight_bytes                      # double-buffered per-layer weights
        + 2 * 2 * rows * D * f32              # double-buffered x / out tiles
        + rows * D * f32                      # residual scratch
        + 8 * rows * F2 * f32                 # live f32 intermediates (generous)
    )
    cap = (44 << 20) if gen == "v7" else (64 << 20)   # v7x: 64 MiB/TC physical
    vmem_limit = int(min(cap, max(32 << 20, int(1.5 * est))))
    # TODO(synk): for very large configs (d_model>=512, d_ffn>=3072) on v7x,
    # split the fused layer kernel (proj1+GELU | SGU+proj2+residual).

    def act_map(b, l):
        return (b, 0)

    def wspec(shape2d):
        return pl.BlockSpec((None,) + shape2d, lambda b, l: (l, 0, 0))

    kernel = functools.partial(
        _gmlp_stack_kernel, f=F, eltwise_bf16=(gen in ("v6", "v7")))

    return pl.pallas_call(
        kernel,
        out_shape=jax.ShapeDtypeStruct((M, D), jnp.float32),
        grid=(M // rows, L),
        in_specs=[
            pl.BlockSpec((rows, D), act_map),
            wspec((1, D)), wspec((1, D)),
            wspec((D, F2)), wspec((1, F2)),
            wspec((1, F)), wspec((1, F)),
            wspec((rows, rows)), wspec((rows, 1)),
            wspec((F, D)), wspec((1, D)),
        ],
        out_specs=pl.BlockSpec((rows, D), act_map),
        scratch_shapes=[pltpu.VMEM((rows, D), jnp.float32)],
        compiler_params=pltpu.CompilerParams(
            dimension_semantics=("parallel", "arbitrary"),
            vmem_limit_bytes=vmem_limit,
        ),
    )(
        emb2d,
        blk["g1"], blk["be1"],
        blk["w1"], blk["b1"],
        blk["gv"], blk["bev"],
        ws_bd, bs_t,
        blk["w2"], blk["b2"],
    )


# ----------------------------------------------------------------------------
# Kernel 3: classification head — in-kernel f32 mean over patches (exact)
# followed by the classifier matmul (lane-padded output, sliced on the host).
# ----------------------------------------------------------------------------
def _head_kernel(e_ref, wc_ref, bc_ref, o_ref):
    m = jnp.mean(e_ref[...], axis=1)                      # (B, D) f32 exact mean
    o_ref[...] = (
        jnp.dot(m.astype(jnp.bfloat16), wc_ref[...],
                preferred_element_type=jnp.float32)
        + bc_ref[...]
    )


def classifier_head(emb3d, wc_bf16, bc_f32):
    B, N, D = emb3d.shape
    Cp = wc_bf16.shape[1]
    # TODO(synk): fold the mean-pool into the last gMLP stack step's epilogue /
    # split over batch so both v7x TensorCores participate (head is negligible).
    return pl.pallas_call(
        _head_kernel,
        out_shape=jax.ShapeDtypeStruct((B, Cp), jnp.float32),
        grid=(1,),
        in_specs=[
            pl.BlockSpec((B, N, D), lambda i: (0, 0, 0)),
            pl.BlockSpec((D, Cp), lambda i: (0, 0)),
            pl.BlockSpec((1, Cp), lambda i: (0, 0)),
        ],
        out_specs=pl.BlockSpec((B, Cp), lambda i: (0, 0)),
    )(emb3d, wc_bf16, bc_f32.reshape(1, Cp))


# ----------------------------------------------------------------------------
# Glue: patch extraction (Conv2d stride=kernel=P im2col + permute/view).
# ----------------------------------------------------------------------------
def extract_patches(x, patch_size):
    B, C, H, W = x.shape
    P = patch_size
    x = x.reshape(B, C, H // P, P, W // P, P)
    x = x.transpose(0, 2, 4, 1, 3, 5)                     # (B, H/P, W/P, C, P, P)
    return x.reshape(B, (H // P) * (W // P), C * P * P)


def gmlp_image_classifier(x, params, patch_size, n_classes):
    gen = _tpu_generation()
    patches = extract_patches(x, patch_size)              # (B, N, K) f32
    B, N, K = patches.shape
    Kp = params["patch_w"].shape[0]
    flat = patches.reshape(B * N, K)
    if Kp > K:                                            # lane-pad K to 128x
        flat = jnp.pad(flat, ((0, 0), (0, Kp - K)))

    emb = patch_embed(flat.astype(jnp.bfloat16),
                      params["patch_w"], params["patch_b"], gen=gen)   # (B*N, D)
    D = emb.shape[-1]

    bt = _pick_batch_tile(B, N, gen)
    h = gmlp_stack(emb, params["blocks"], bt=bt, n=N, gen=gen)          # (B*N, D)

    logits_padded = classifier_head(h.reshape(B, N, D),
                                    params["cls_w"], params["cls_b"])
    return logits_padded[:, :n_classes]                   # strip lane padding


# ----------------------------------------------------------------------------
# Deterministic parameter init (shapes follow the PyTorch __init__).
# Matmul weights in bf16 (stacked over layers); biases / LN params in f32.
# ----------------------------------------------------------------------------
def init_params(key, in_channels, n_classes, image_size, patch_size,
                d_model, d_ffn, num_layers):
    num_patches = (image_size // patch_size) ** 2
    seq_len = num_patches                                 # SGU Conv1d channel count
    K = in_channels * patch_size * patch_size
    Kp = ((K + 127) // 128) * 128
    keys = jax.random.split(key, 2 + num_layers)

    def lin(k, fan_in, fan_out):
        kw, kb = jax.random.split(k)
        bound = 1.0 / math.sqrt(fan_in)
        w = jax.random.uniform(kw, (fan_in, fan_out), jnp.float32, -bound, bound)
        b = jax.random.uniform(kb, (fan_out,), jnp.float32, -bound, bound)
        return w, b

    # patcher Conv2d as a matmul over flattened (C, P, P) patches, K lane-padded.
    patch_w, patch_b = lin(keys[0], K, d_model)
    patch_w_p = jnp.zeros((Kp, d_model), jnp.float32).at[:K].set(patch_w)

    # classifier, lane-padded to a multiple of 128 (inert zero columns).
    cls_w, cls_b = lin(keys[1], d_model, n_classes)
    c_pad = ((n_classes + 127) // 128) * 128
    cls_w_p = jnp.zeros((d_model, c_pad), jnp.float32).at[:, :n_classes].set(cls_w)
    cls_b_p = jnp.zeros((c_pad,), jnp.float32).at[:n_classes].set(cls_b)

    g1, be1, w1, b1, gv, bev, ws, bs, w2, b2 = ([] for _ in range(10))
    for l in range(num_layers):
        k1, k2, k3 = jax.random.split(keys[2 + l], 3)
        w1_, b1_ = lin(k1, d_model, 2 * d_ffn)            # channel_projection_1 (fused)
        ws_, _ = lin(k2, seq_len, seq_len)                # SGU spatial projection weight
        w2_, b2_ = lin(k3, d_ffn, d_model)                # channel_projection_2
        g1.append(jnp.ones((1, d_model), jnp.float32))
        be1.append(jnp.zeros((1, d_model), jnp.float32))
        w1.append(w1_.astype(jnp.bfloat16))
        b1.append(b1_.reshape(1, 2 * d_ffn))
        gv.append(jnp.ones((1, d_ffn), jnp.float32))
        bev.append(jnp.zeros((1, d_ffn), jnp.float32))
        ws.append(ws_.astype(jnp.bfloat16))
        bs.append(jnp.ones((seq_len, 1), jnp.float32))    # nn.init.constant_(bias, 1.0)
        w2.append(w2_.astype(jnp.bfloat16))
        b2.append(b2_.reshape(1, d_model))

    blocks = dict(
        g1=jnp.stack(g1), be1=jnp.stack(be1),
        w1=jnp.stack(w1), b1=jnp.stack(b1),
        gv=jnp.stack(gv), bev=jnp.stack(bev),
        ws=jnp.stack(ws), bs=jnp.stack(bs),
        w2=jnp.stack(w2), b2=jnp.stack(b2),
    )
    return dict(
        patch_w=patch_w_p.astype(jnp.bfloat16), patch_b=patch_b,
        cls_w=cls_w_p.astype(jnp.bfloat16), cls_b=cls_b_p,
        blocks=blocks,
    )


if __name__ == "__main__":
    # Small shapes consistent with the module: 16x16 image, patch 4 -> 16 patches.
    # d_model / d_ffn multiples of 128 so every feature axis is lane-dense.
    B, C, IMG, P = 2, 4, 16, 4
    d_model, d_ffn, num_layers, n_classes = 128, 256, 2, 10

    key = jax.random.PRNGKey(0)
    kx, kp = jax.random.split(key)
    x = jax.random.normal(kx, (B, C, IMG, IMG), jnp.float32)
    params = init_params(kp, C, n_classes, IMG, P, d_model, d_ffn, num_layers)

    fwd = jax.jit(functools.partial(gmlp_image_classifier,
                                    patch_size=P, n_classes=n_classes))
    out = jax.block_until_ready(fwd(x, params))
    assert out.shape == (B, n_classes) and out.dtype == jnp.float32
    assert bool(jnp.all(jnp.isfinite(out)))
    print("KERNEL_OK")
</pallas_src>

<mosaic_0001>
module attributes {stable_mosaic.version = 11 : i64} {
  func.func @_patch_embed_kernel(%arg0: i32, %arg1: memref<32x128xbf16, #tpu.memory_space<vmem>>, %arg2: memref<128x128xbf16, #tpu.memory_space<vmem>>, %arg3: memref<1x128xf32, #tpu.memory_space<vmem>>, %arg4: memref<32x128xf32, #tpu.memory_space<vmem>>) attributes {dimension_semantics = [#tpu.dimension_semantics<parallel>], iteration_bounds = array<i64: 1>, scalar_prefetch = 0 : i64, scratch_operands = 0 : i64, tpu.core_type = #tpu.core_type<tc>, window_params = [{transform_indices = @transform_0, window_bounds = array<i64: 32, 128>}, {pipeline_mode = #tpu.pipeline_mode<synchronous>, transform_indices = @transform_1, window_bounds = array<i64: 128, 128>}, {pipeline_mode = #tpu.pipeline_mode<synchronous>, transform_indices = @transform_2, window_bounds = array<i64: 1, 128>}, {transform_indices = @transform_3, window_bounds = array<i64: 32, 128>}]} {
    %c0 = arith.constant 0 : index
    %c0_0 = arith.constant 0 : index
    %0 = vector.load %arg1[%c0, %c0_0] : memref<32x128xbf16, #tpu.memory_space<vmem>>, vector<32x128xbf16>
    %c0_1 = arith.constant 0 : index
    %c0_2 = arith.constant 0 : index
    %1 = vector.load %arg2[%c0_1, %c0_2] : memref<128x128xbf16, #tpu.memory_space<vmem>>, vector<128x128xbf16>
    %cst = arith.constant dense<0.000000e+00> : vector<32x128xf32>
    %2 = tpu.matmul %0, %1, %cst {dimension_numbers = #tpu.dot_dimension_numbers<[1], [0], [0], [1], [0, 0, 1, 1], [], []>} : vector<32x128xbf16>, vector<128x128xbf16>, vector<32x128xf32> -> vector<32x128xf32>
    %c0_3 = arith.constant 0 : index
    %c0_4 = arith.constant 0 : index
    %3 = vector.load %arg3[%c0_3, %c0_4] : memref<1x128xf32, #tpu.memory_space<vmem>>, vector<1x128xf32>
    %4 = vector.broadcast %3 : vector<1x128xf32> to vector<32x128xf32>
    %5 = arith.addf %2, %4 : vector<32x128xf32>
    %c0_5 = arith.constant 0 : index
    %c0_6 = arith.constant 0 : index
    %6 = vector.load %arg4[%c0_5, %c0_6] : memref<32x128xf32, #tpu.memory_space<vmem>>, vector<32x128xf32>
    tpu.vector_store %arg4[%c0_5, %c0_6], %5 {strides = array<i32>} : memref<32x128xf32, #tpu.memory_space<vmem>>, vector<32x128xf32>,
    return
  }
  func.func @transform_0(%arg0: i32) -> (i32, i32) {
    %c0_i32 = arith.constant 0 : i32
    %c0_i32_0 = arith.constant 0 : i32
    return %arg0, %c0_i32 : i32, i32
  }
  func.func @transform_1(%arg0: i32) -> (i32, i32) {
    %c0_i32 = arith.constant 0 : i32
    %c0_i32_0 = arith.constant 0 : i32
    %c0_i32_1 = arith.constant 0 : i32
    return %c0_i32, %c0_i32_0 : i32, i32
  }
  func.func @transform_2(%arg0: i32) -> (i32, i32) {
    %c0_i32 = arith.constant 0 : i32
    %c0_i32_0 = arith.constant 0 : i32
    %c0_i32_1 = arith.constant 0 : i32
    return %c0_i32, %c0_i32_0 : i32, i32
  }
  func.func @transform_3(%arg0: i32) -> (i32, i32) {
    %c0_i32 = arith.constant 0 : i32
    %c0_i32_0 = arith.constant 0 : i32
    return %arg0, %c0_i32 : i32, i32
  }
}

module attributes {stable_mosaic.version = 11 : i64} {
  func.func @_gmlp_stack_kernel(%arg0: i32, %arg1: i32, %arg2: memref<32x128xf32, #tpu.memory_space<vmem>>, %arg3: memref<1x1x128xf32, #tpu.memory_space<vmem>>, %arg4: memref<1x1x128xf32, #tpu.memory_space<vmem>>, %arg5: memref<1x128x512xbf16, #tpu.memory_space<vmem>>, %arg6: memref<1x1x512xf32, #tpu.memory_space<vmem>>, %arg7: memref<1x1x256xf32, #tpu.memory_space<vmem>>, %arg8: memref<1x1x256xf32, #tpu.memory_space<vmem>>, %arg9: memref<1x32x32xbf16, #tpu.memory_space<vmem>>, %arg10: memref<1x32x1xf32, #tpu.memory_space<vmem>>, %arg11: memref<1x256x128xbf16, #tpu.memory_space<vmem>>, %arg12: memref<1x1x128xf32, #tpu.memory_space<vmem>>, %arg13: memref<32x128xf32, #tpu.memory_space<vmem>>, %arg14: memref<32x128xf32, #tpu.memory_space<vmem>>) attributes {dimension_semantics = [#tpu.dimension_semantics<parallel>, #tpu.dimension_semantics<arbitrary>], iteration_bounds = array<i64: 1, 2>, scalar_prefetch = 0 : i64, scratch_operands = 1 : i64, tpu.core_type = #tpu.core_type<tc>, window_params = [{transform_indices = @transform_0, window_bounds = array<i64: 32, 128>}, {transform_indices = @transform_1, window_bounds = array<i64: 1, 1, 128>}, {transform_indices = @transform_2, window_bounds = array<i64: 1, 1, 128>}, {transform_indices = @transform_3, window_bounds = array<i64: 1, 128, 512>}, {transform_indices = @transform_4, window_bounds = array<i64: 1, 1, 512>}, {transform_indices = @transform_5, window_bounds = array<i64: 1, 1, 256>}, {transform_indices = @transform_6, window_bounds = array<i64: 1, 1, 256>}, {transform_indices = @transform_7, window_bounds = array<i64: 1, 32, 32>}, {transform_indices = @transform_8, window_bounds = array<i64: 1, 32, 1>}, {transform_indices = @transform_9, window_bounds = array<i64: 1, 256, 128>}, {transform_indices = @transform_10, window_bounds = array<i64: 1, 1, 128>}, {transform_indices = @transform_11, window_bounds = array<i64: 32, 128>}]} {
    %c0_i32 = arith.constant 0 : i32
    %0 = arith.cmpi eq, %arg1, %c0_i32 : i32
    %1 = arith.extui %0 : i1 to i32
    %c0_i32_0 = arith.constant 0 : i32
    %2 = arith.cmpi ne, %1, %c0_i32_0 : i32
    scf.if %2 {
      %c0_51 = arith.constant 0 : index
      %c0_52 = arith.constant 0 : index
      %101 = vector.load %arg2[%c0_51, %c0_52] : memref<32x128xf32, #tpu.memory_space<vmem>>, vector<32x128xf32>
      %c0_53 = arith.constant 0 : index
      %c0_54 = arith.constant 0 : index
      %102 = vector.load %arg14[%c0_53, %c0_54] : memref<32x128xf32, #tpu.memory_space<vmem>>, vector<32x128xf32>
      tpu.vector_store %arg14[%c0_53, %c0_54], %101 {strides = array<i32>} : memref<32x128xf32, #tpu.memory_space<vmem>>, vector<32x128xf32>,
    } else {
    }
    %c0 = arith.constant 0 : index
    %c0_1 = arith.constant 0 : index
    %3 = vector.load %arg14[%c0, %c0_1] : memref<32x128xf32, #tpu.memory_space<vmem>>, vector<32x128xf32>
    %c0_2 = arith.constant 0 : index
    %c0_3 = arith.constant 0 : index
    %c0_4 = arith.constant 0 : index
    %4 = vector.load %arg3[%c0_2, %c0_3, %c0_4] : memref<1x1x128xf32, #tpu.memory_space<vmem>>, vector<1x1x128xf32>
    %5 = vector.shape_cast %4 : vector<1x1x128xf32> to vector<1x128xf32>
    %c0_5 = arith.constant 0 : index
    %c0_6 = arith.constant 0 : index
    %c0_7 = arith.constant 0 : index
    %6 = vector.load %arg4[%c0_5, %c0_6, %c0_7] : memref<1x1x128xf32, #tpu.memory_space<vmem>>, vector<1x1x128xf32>
    %7 = vector.shape_cast %6 : vector<1x1x128xf32> to vector<1x128xf32>
    %cst = arith.constant dense<0.000000e+00> : vector<32xf32>
    %8 = vector.multi_reduction <add>, %3, %cst [1] : vector<32x128xf32> to vector<32xf32>
    %9 = vector.shape_cast %8 : vector<32xf32> to vector<32x1xf32>
    %cst_8 = arith.constant 1.280000e+02 : f32
    %10 = vector.broadcast %cst_8 : f32 to vector<32x1xf32>
    %11 = arith.divf %9, %10 : vector<32x1xf32>
    %12 = vector.broadcast %11 : vector<32x1xf32> to vector<32x128xf32>
    %13 = arith.subf %3, %12 : vector<32x128xf32>
    %14 = arith.mulf %13, %13 : vector<32x128xf32>
    %cst_9 = arith.constant dense<0.000000e+00> : vector<32xf32>
    %15 = vector.multi_reduction <add>, %14, %cst_9 [1] : vector<32x128xf32> to vector<32xf32>
    %16 = vector.shape_cast %15 : vector<32xf32> to vector<32x1xf32>
    %cst_10 = arith.constant 1.280000e+02 : f32
    %17 = vector.broadcast %cst_10 : f32 to vector<32x1xf32>
    %18 = arith.divf %16, %17 : vector<32x1xf32>
    %19 = vector.broadcast %11 : vector<32x1xf32> to vector<32x128xf32>
    %20 = arith.subf %3, %19 : vector<32x128xf32>
    %cst_11 = arith.constant 9.99999974E-6 : f32
    %21 = vector.broadcast %cst_11 : f32 to vector<32x1xf32>
    %22 = arith.addf %18, %21 : vector<32x1xf32>
    %23 = math.rsqrt %22 : vector<32x1xf32>
    %24 = vector.broadcast %23 : vector<32x1xf32> to vector<32x128xf32>
    %25 = arith.mulf %20, %24 : vector<32x128xf32>
    %26 = vector.broadcast %5 : vector<1x128xf32> to vector<32x128xf32>
    %27 = arith.mulf %25, %26 : vector<32x128xf32>
    %28 = vector.broadcast %7 : vector<1x128xf32> to vector<32x128xf32>
    %29 = arith.addf %27, %28 : vector<32x128xf32>
    %30 = arith.truncf %29 : vector<32x128xf32> to vector<32x128xbf16>
    %c0_12 = arith.constant 0 : index
    %c0_13 = arith.constant 0 : index
    %c0_14 = arith.constant 0 : index
    %31 = vector.load %arg5[%c0_12, %c0_13, %c0_14] : memref<1x128x512xbf16, #tpu.memory_space<vmem>>, vector<1x128x512xbf16>
    %32 = vector.shape_cast %31 : vector<1x128x512xbf16> to vector<128x512xbf16>
    %cst_15 = arith.constant dense<0.000000e+00> : vector<32x512xf32>
    %33 = tpu.matmul %30, %32, %cst_15 {dimension_numbers = #tpu.dot_dimension_numbers<[1], [0], [0], [1], [0, 0, 1, 1], [], []>} : vector<32x128xbf16>, vector<128x512xbf16>, vector<32x512xf32> -> vector<32x512xf32>
    %c0_16 = arith.constant 0 : index
    %c0_17 = arith.constant 0 : index
    %c0_18 = arith.constant 0 : index
    %34 = vector.load %arg6[%c0_16, %c0_17, %c0_18] : memref<1x1x512xf32, #tpu.memory_space<vmem>>, vector<1x1x512xf32>
    %35 = vector.shape_cast %34 : vector<1x1x512xf32> to vector<1x512xf32>
    %36 = vector.broadcast %35 : vector<1x512xf32> to vector<32x512xf32>
    %37 = arith.addf %33, %36 : vector<32x512xf32>
    %cst_19 = arith.constant 5.000000e-01 : f32
    %38 = vector.broadcast %cst_19 : f32 to vector<32x512xf32>
    %39 = arith.mulf %38, %37 : vector<32x512xf32>
    %cst_20 = arith.constant 4.471500e-02 : f32
    %40 = vector.broadcast %cst_20 : f32 to vector<32x512xf32>
    %41 = arith.mulf %40, %37 : vector<32x512xf32>
    %42 = arith.mulf %41, %37 : vector<32x512xf32>
    %43 = arith.mulf %42, %37 : vector<32x512xf32>
    %44 = arith.addf %37, %43 : vector<32x512xf32>
    %cst_21 = arith.constant 0.797884583 : f32
    %45 = vector.broadcast %cst_21 : f32 to vector<32x512xf32>
    %46 = arith.mulf %45, %44 : vector<32x512xf32>
    %47 = math.tanh %46 : vector<32x512xf32>
    %cst_22 = arith.constant 1.000000e+00 : f32
    %48 = vector.broadcast %cst_22 : f32 to vector<32x512xf32>
    %49 = arith.addf %48, %47 : vector<32x512xf32>
    %50 = arith.mulf %39, %49 : vector<32x512xf32>
    %51 = vector.extract_strided_slice %50 {offsets = [0, 0], sizes = [32, 256], strides = [1, 1]} : vector<32x512xf32> to vector<32x256xf32>
    %52 = vector.extract_strided_slice %50 {offsets = [0, 256], sizes = [32, 256], strides = [1, 1]} : vector<32x512xf32> to vector<32x256xf32>
    %c0_23 = arith.constant 0 : index
    %c0_24 = arith.constant 0 : index
    %c0_25 = arith.constant 0 : index
    %53 = vector.load %arg7[%c0_23, %c0_24, %c0_25] : memref<1x1x256xf32, #tpu.memory_space<vmem>>, vector<1x1x256xf32>
    %54 = vector.shape_cast %53 : vector<1x1x256xf32> to vector<1x256xf32>
    %c0_26 = arith.constant 0 : index
    %c0_27 = arith.constant 0 : index
    %c0_28 = arith.constant 0 : index
    %55 = vector.load %arg8[%c0_26, %c0_27, %c0_28] : memref<1x1x256xf32, #tpu.memory_space<vmem>>, vector<1x1x256xf32>
    %56 = vector.shape_cast %55 : vector<1x1x256xf32> to vector<1x256xf32>
    %cst_29 = arith.constant dense<0.000000e+00> : vector<32xf32>
    %57 = vector.multi_reduction <add>, %52, %cst_29 [1] : vector<32x256xf32> to vector<32xf32>
    %58 = vector.shape_cast %57 : vector<32xf32> to vector<32x1xf32>
    %cst_30 = arith.constant 2.560000e+02 : f32
    %59 = vector.broadcast %cst_30 : f32 to vector<32x1xf32>
    %60 = arith.divf %58, %59 : vector<32x1xf32>
    %61 = vector.broadcast %60 : vector<32x1xf32> to vector<32x256xf32>
    %62 = arith.subf %52, %61 : vector<32x256xf32>
    %63 = arith.mulf %62, %62 : vector<32x256xf32>
    %cst_31 = arith.constant dense<0.000000e+00> : vector<32xf32>
    %64 = vector.multi_reduction <add>, %63, %cst_31 [1] : vector<32x256xf32> to vector<32xf32>
    %65 = vector.shape_cast %64 : vector<32xf32> to vector<32x1xf32>
    %cst_32 = arith.constant 2.560000e+02 : f32
    %66 = vector.broadcast %cst_32 : f32 to vector<32x1xf32>
    %67 = arith.divf %65, %66 : vector<32x1xf32>
    %68 = vector.broadcast %60 : vector<32x1xf32> to vector<32x256xf32>
    %69 = arith.subf %52, %68 : vector<32x256xf32>
    %cst_33 = arith.constant 9.99999974E-6 : f32
    %70 = vector.broadcast %cst_33 : f32 to vector<32x1xf32>
    %71 = arith.addf %67, %70 : vector<32x1xf32>
    %72 = math.rsqrt %71 : vector<32x1xf32>
    %73 = vector.broadcast %72 : vector<32x1xf32> to vector<32x256xf32>
    %74 = arith.mulf %69, %73 : vector<32x256xf32>
    %75 = vector.broadcast %54 : vector<1x256xf32> to vector<32x256xf32>
    %76 = arith.mulf %74, %75 : vector<32x256xf32>
    %77 = vector.broadcast %56 : vector<1x256xf32> to vector<32x256xf32>
    %78 = arith.addf %76, %77 : vector<32x256xf32>
    %c0_34 = arith.constant 0 : index
    %c0_35 = arith.constant 0 : index
    %c0_36 = arith.constant 0 : index
    %79 = vector.load %arg9[%c0_34, %c0_35, %c0_36] : memref<1x32x32xbf16, #tpu.memory_space<vmem>>, vector<1x32x32xbf16>
    %80 = vector.shape_cast %79 : vector<1x32x32xbf16> to vector<32x32xbf16>
    %81 = arith.truncf %78 : vector<32x256xf32> to vector<32x256xbf16>
    %cst_37 = arith.constant dense<0.000000e+00> : vector<32x256xf32>
    %82 = tpu.matmul %80, %81, %cst_37 {dimension_numbers = #tpu.dot_dimension_numbers<[1], [0], [0], [1], [0, 0, 1, 1], [], []>} : vector<32x32xbf16>, vector<32x256xbf16>, vector<32x256xf32> -> vector<32x256xf32>
    %c0_38 = arith.constant 0 : index
    %c0_39 = arith.constant 0 : index
    %c0_40 = arith.constant 0 : index
    %83 = vector.load %arg10[%c0_38, %c0_39, %c0_40] : memref<1x32x1xf32, #tpu.memory_space<vmem>>, vector<1x32x1xf32>
    %84 = vector.shape_cast %83 : vector<1x32x1xf32> to vector<32x1xf32>
    %85 = vector.broadcast %84 : vector<32x1xf32> to vector<32x256xf32>
    %86 = arith.addf %82, %85 : vector<32x256xf32>
    %87 = arith.mulf %51, %86 : vector<32x256xf32>
    %88 = arith.truncf %87 : vector<32x256xf32> to vector<32x256xbf16>
    %c0_41 = arith.constant 0 : index
    %c0_42 = arith.constant 0 : index
    %c0_43 = arith.constant 0 : index
    %89 = vector.load %arg11[%c0_41, %c0_42, %c0_43] : memref<1x256x128xbf16, #tpu.memory_space<vmem>>, vector<1x256x128xbf16>
    %90 = vector.shape_cast %89 : vector<1x256x128xbf16> to vector<256x128xbf16>
    %cst_44 = arith.constant dense<0.000000e+00> : vector<32x128xf32>
    %91 = tpu.matmul %88, %90, %cst_44 {dimension_numbers = #tpu.dot_dimension_numbers<[1], [0], [0], [1], [0, 0, 1, 1], [], []>} : vector<32x256xbf16>, vector<256x128xbf16>, vector<32x128xf32> -> vector<32x128xf32>
    %c0_45 = arith.constant 0 : index
    %c0_46 = arith.constant 0 : index
    %c0_47 = arith.constant 0 : index
    %92 = vector.load %arg12[%c0_45, %c0_46, %c0_47] : memref<1x1x128xf32, #tpu.memory_space<vmem>>, vector<1x1x128xf32>
    %93 = vector.shape_cast %92 : vector<1x1x128xf32> to vector<1x128xf32>
    %94 = vector.broadcast %93 : vector<1x128xf32> to vector<32x128xf32>
    %95 = arith.addf %91, %94 : vector<32x128xf32>
    %96 = arith.addf %95, %3 : vector<32x128xf32>
    %c0_48 = arith.constant 0 : index
    %c0_49 = arith.constant 0 : index
    %97 = vector.load %arg14[%c0_48, %c0_49] : memref<32x128xf32, #tpu.memory_space<vmem>>, vector<32x128xf32>
    tpu.vector_store %arg14[%c0_48, %c0_49], %96 {strides = array<i32>} : memref<32x128xf32, #tpu.memory_space<vmem>>, vector<32x128xf32>,
    %c1_i32 = arith.constant 1 : i32
    %98 = arith.cmpi eq, %arg1, %c1_i32 : i32
    %99 = arith.extui %98 : i1 to i32
    %c0_i32_50 = arith.constant 0 : i32
    %100 = arith.cmpi ne, %99, %c0_i32_50 : i32
    scf.if %100 {
      %c0_51 = arith.constant 0 : index
      %c0_52 = arith.constant 0 : index
      %101 = vector.load %arg13[%c0_51, %c0_52] : memref<32x128xf32, #tpu.memory_space<vmem>>, vector<32x128xf32>
      tpu.vector_store %arg13[%c0_51, %c0_52], %96 {strides = array<i32>} : memref<32x128xf32, #tpu.memory_space<vmem>>, vector<32x128xf32>,
    } else {
    }
    return
  }
  func.func @transform_0(%arg0: i32, %arg1: i32) -> (i32, i32) {
    %c0_i32 = arith.constant 0 : i32
    %c0_i32_0 = arith.constant 0 : i32
    return %arg0, %c0_i32 : i32, i32
  }
  func.func @transform_1(%arg0: i32, %arg1: i32) -> (i32, i32, i32) {
    %c0_i32 = arith.constant 0 : i32
    %c0_i32_0 = arith.constant 0 : i32
    %c0_i32_1 = arith.constant 0 : i32
    return %arg1, %c0_i32, %c0_i32_0 : i32, i32, i32
  }
  func.func @transform_2(%arg0: i32, %arg1: i32) -> (i32, i32, i32) {
    %c0_i32 = arith.constant 0 : i32
    %c0_i32_0 = arith.constant 0 : i32
    %c0_i32_1 = arith.constant 0 : i32
    return %arg1, %c0_i32, %c0_i32_0 : i32, i32, i32
  }
  func.func @transform_3(%arg0: i32, %arg1: i32) -> (i32, i32, i32) {
    %c0_i32 = arith.constant 0 : i32
    %c0_i32_0 = arith.constant 0 : i32
    %c0_i32_1 = arith.constant 0 : i32
    return %arg1, %c0_i32, %c0_i32_0 : i32, i32, i32
  }
  func.func @transform_4(%arg0: i32, %arg1: i32) -> (i32, i32, i32) {
    %c0_i32 = arith.constant 0 : i32
    %c0_i32_0 = arith.constant 0 : i32
    %c0_i32_1 = arith.constant 0 : i32
    return %arg1, %c0_i32, %c0_i32_0 : i32, i32, i32
  }
  func.func @transform_5(%arg0: i32, %arg1: i32) -> (i32, i32, i32) {
    %c0_i32 = arith.constant 0 : i32
    %c0_i32_0 = arith.constant 0 : i32
    %c0_i32_1 = arith.constant 0 : i32
    return %arg1, %c0_i32, %c0_i32_0 : i32, i32, i32
  }
  func.func @transform_6(%arg0: i32, %arg1: i32) -> (i32, i32, i32) {
    %c0_i32 = arith.constant 0 : i32
    %c0_i32_0 = arith.constant 0 : i32
    %c0_i32_1 = arith.constant 0 : i32
    return %arg1, %c0_i32, %c0_i32_0 : i32, i32, i32
  }
  func.func @transform_7(%arg0: i32, %arg1: i32) -> (i32, i32, i32) {
    %c0_i32 = arith.constant 0 : i32
    %c0_i32_0 = arith.constant 0 : i32
    %c0_i32_1 = arith.constant 0 : i32
    return %arg1, %c0_i32, %c0_i32_0 : i32, i32, i32
  }
  func.func @transform_8(%arg0: i32, %arg1: i32) -> (i32, i32, i32) {
    %c0_i32 = arith.constant 0 : i32
    %c0_i32_0 = arith.constant 0 : i32
    %c0_i32_1 = arith.constant 0 : i32
    return %arg1, %c0_i32, %c0_i32_0 : i32, i32, i32
  }
  func.func @transform_9(%arg0: i32, %arg1: i32) -> (i32, i32, i32) {
    %c0_i32 = arith.constant 0 : i32
    %c0_i32_0 = arith.constant 0 : i32
    %c0_i32_1 = arith.constant 0 : i32
    return %arg1, %c0_i32, %c0_i32_0 : i32, i32, i32
  }
  func.func @transform_10(%arg0: i32, %arg1: i32) -> (i32, i32, i32) {
    %c0_i32 = arith.constant 0 : i32
    %c0_i32_0 = arith.constant 0 : i32
    %c0_i32_1 = arith.constant 0 : i32
    return %arg1, %c0_i32, %c0_i32_0 : i32, i32, i32
  }
  func.func @transform_11(%arg0: i32, %arg1: i32) -> (i32, i32) {
    %c0_i32 = arith.constant 0 : i32
    %c0_i32_0 = arith.constant 0 : i32
    return %arg0, %c0_i32 : i32, i32
  }
}

module attributes {stable_mosaic.version = 11 : i64} {
  func.func @_head_kernel(%arg0: i32, %arg1: memref<2x16x128xf32, #tpu.memory_space<vmem>>, %arg2: memref<128x128xbf16, #tpu.memory_space<vmem>>, %arg3: memref<1x128xf32, #tpu.memory_space<vmem>>, %arg4: memref<2x128xf32, #tpu.memory_space<vmem>>) attributes {dimension_semantics = [#tpu.dimension_semantics<arbitrary>], iteration_bounds = array<i64: 1>, scalar_prefetch = 0 : i64, scratch_operands = 0 : i64, tpu.core_type = #tpu.core_type<tc>, window_params = [{pipeline_mode = #tpu.pipeline_mode<synchronous>, transform_indices = @transform_0, window_bounds = array<i64: 2, 16, 128>}, {pipeline_mode = #tpu.pipeline_mode<synchronous>, transform_indices = @transform_1, window_bounds = array<i64: 128, 128>}, {pipeline_mode = #tpu.pipeline_mode<synchronous>, transform_indices = @transform_2, window_bounds = array<i64: 1, 128>}, {pipeline_mode = #tpu.pipeline_mode<synchronous>, transform_indices = @transform_3, window_bounds = array<i64: 2, 128>}]} {
    %c0 = arith.constant 0 : index
    %c0_0 = arith.constant 0 : index
    %c0_1 = arith.constant 0 : index
    %0 = vector.load %arg1[%c0, %c0_0, %c0_1] : memref<2x16x128xf32, #tpu.memory_space<vmem>>, vector<2x16x128xf32>
    %cst = arith.constant dense<0.000000e+00> : vector<2x128xf32>
    %1 = vector.multi_reduction <add>, %0, %cst [1] : vector<2x16x128xf32> to vector<2x128xf32>
    %cst_2 = arith.constant 1.600000e+01 : f32
    %2 = vector.broadcast %cst_2 : f32 to vector<2x128xf32>
    %3 = arith.divf %1, %2 : vector<2x128xf32>
    %4 = arith.truncf %3 : vector<2x128xf32> to vector<2x128xbf16>
    %c0_3 = arith.constant 0 : index
    %c0_4 = arith.constant 0 : index
    %5 = vector.load %arg2[%c0_3, %c0_4] : memref<128x128xbf16, #tpu.memory_space<vmem>>, vector<128x128xbf16>
    %cst_5 = arith.constant dense<0.000000e+00> : vector<2x128xf32>
    %6 = tpu.matmul %4, %5, %cst_5 {dimension_numbers = #tpu.dot_dimension_numbers<[1], [0], [0], [1], [0, 0, 1, 1], [], []>} : vector<2x128xbf16>, vector<128x128xbf16>, vector<2x128xf32> -> vector<2x128xf32>
    %c0_6 = arith.constant 0 : index
    %c0_7 = arith.constant 0 : index
    %7 = vector.load %arg3[%c0_6, %c0_7] : memref<1x128xf32, #tpu.memory_space<vmem>>, vector<1x128xf32>
    %8 = vector.broadcast %7 : vector<1x128xf32> to vector<2x128xf32>
    %9 = arith.addf %6, %8 : vector<2x128xf32>
    %c0_8 = arith.constant 0 : index
    %c0_9 = arith.constant 0 : index
    %10 = vector.load %arg4[%c0_8, %c0_9] : memref<2x128xf32, #tpu.memory_space<vmem>>, vector<2x128xf32>
    tpu.vector_store %arg4[%c0_8, %c0_9], %9 {strides = array<i32>} : memref<2x128xf32, #tpu.memory_space<vmem>>, vector<2x128xf32>,
    return
  }
  func.func @transform_0(%arg0: i32) -> (i32, i32, i32) {
    %c0_i32 = arith.constant 0 : i32
    %c0_i32_0 = arith.constant 0 : i32
    %c0_i32_1 = arith.constant 0 : i32
    %c0_i32_2 = arith.constant 0 : i32
    return %c0_i32, %c0_i32_0, %c0_i32_1 : i32, i32, i32
  }
  func.func @transform_1(%arg0: i32) -> (i32, i32) {
    %c0_i32 = arith.constant 0 : i32
    %c0_i32_0 = arith.constant 0 : i32
    %c0_i32_1 = arith.constant 0 : i32
    return %c0_i32, %c0_i32_0 : i32, i32
  }
  func.func @transform_2(%arg0: i32) -> (i32, i32) {
    %c0_i32 = arith.constant 0 : i32
    %c0_i32_0 = arith.constant 0 : i32
    %c0_i32_1 = arith.constant 0 : i32
    return %c0_i32, %c0_i32_0 : i32, i32
  }
  func.func @transform_3(%arg0: i32) -> (i32, i32) {
    %c0_i32 = arith.constant 0 : i32
    %c0_i32_0 = arith.constant 0 : i32
    %c0_i32_1 = arith.constant 0 : i32
    return %c0_i32, %c0_i32_0 : i32, i32
  }
}

</mosaic_0001>

<bundles_post_ra>
// kernel: gmlp_image_classifier.3
= control target key start
LH: loop header
LB: loop body
LE: loop exit
PB: predicated region body
PF: predicated region fallthrough
CT: control target
= control target key end

     0   :  { %s249_s1 = inlined_call_operand.vmem [shape: bf16[128,128], index: 1, kind: input, shape index: {}]   ;;  %s250_s2 = inlined_call_operand.vmem [shape: f32[1,128], index: 2, kind: input, shape index: {}]   ;;  %s251_s0 = inlined_call_operand.vmem [shape: bf16[32,128], index: 0, kind: input, shape index: {}]   ;;  %s252_s3 = inlined_call_operand.vmem [shape: f32[32,128], index: 3, kind: output, shape index: {}]  }
   0x1   :  { %v174_v0 = vld [vmem:[%s249_s1 + $0x38] sm:$0xff]  ;;  %v173_v1 = vld [vmem:[%s249_s1 + $0x30] sm:$0xff]  ;;  %v172_v2 = vld [vmem:[%s249_s1 + $0x28] sm:$0xff] }
   0x2   :  { %98 = vmatpush.bf16.msra.mxu0 %v174_v0  ;;  %175 = vmatpush.bf16.msra.mxu1 %v174_v0  ;;  %v171_v3 = vld [vmem:[%s249_s1 + $0x20] sm:$0xff]  ;;  %v170_v4 = vld [vmem:[%s249_s1 + $0x18] sm:$0xff]  ;;  %v169_v5 = vld [vmem:[%s249_s1 + $0x10] sm:$0xff] }
   0x3   :  { %v168_v6 = vld [vmem:[%s249_s1 + $0x8] sm:$0xff]  ;;  %v167_v7 = vld [vmem:[%s249_s1] sm:$0xff] }
   0x4   :  { %v165_v8 = vld [vmem:[%s251_s0] sm:$0xff]  ;;  %v166_v9 = vld [vmem:[%s251_s0 + $0x8] sm:$0xff] }
   0x5   :  { %v183_v10 = vld [vmem:[%s250_s2] ss:$0 sm:$0xff] }
   0x6   :  { %99 = vmatpush.bf16.msra.mxu0 %v173_v1  ;;  %176 = vmatpush.bf16.msra.mxu1 %v173_v1 }
   0xa   :  { %100 = vmatpush.bf16.msra.mxu0 %v172_v2  ;;  %177 = vmatpush.bf16.msra.mxu1 %v172_v2 }
   0xe   :  { %101 = vmatpush.bf16.msra.mxu0 %v171_v3  ;;  %178 = vmatpush.bf16.msra.mxu1 %v171_v3 }
  0x12   :  { %102 = vmatpush.bf16.msra.mxu0 %v170_v4  ;;  %179 = vmatpush.bf16.msra.mxu1 %v170_v4 }
  0x16   :  { %103 = vmatpush.bf16.msra.mxu0 %v169_v5  ;;  %180 = vmatpush.bf16.msra.mxu1 %v169_v5 }
  0x1a   :  { %104 = vmatpush.bf16.msra.mxu0 %v168_v6  ;;  %181 = vmatpush.bf16.msra.mxu1 %v168_v6 }
  0x1e   :  { %105 = vmatpush.bf16.msra.mxu0 %v167_v7  ;;  %182 = vmatpush.bf16.msra.mxu1 %v167_v7 }
  0x21   :  { %106 = vmatmul.bf16.vlgmr.msra.gmra.mxu0 %v165_v8  ;;  %111 = vmatmul.bf16.vlgmr.msra.gmra.mxu1 %v166_v9 }
  0x9e   :  { %v107_v11 = vpop.f32.mrf.mxu0  ;;  %v112_v12 = vpop.f32.mrf.mxu1 }
  0x9f   :  { %v108_v13 = vadd.f32 %v183_v10, %v107_v11  ;;  %v113_v14 = vadd.f32 %v183_v10, %v112_v12 }
  0xa1   :  { %117 = vst [vmem:[%s252_s3] sm:$0xff] %v108_v13 }
  0xa2   :  { %119 = vst [vmem:[%s252_s3 + $0x10] sm:$0xff] %v113_v14 }
  0xa6   :  { %v109_v15 = vpop.f32.mrf.mxu0  ;;  %v114_v16 = vpop.f32.mrf.mxu1 }
  0xa7   :  { %v110_v17 = vadd.f32 %v183_v10, %v109_v15  ;;  %v115_v18 = vadd.f32 %v183_v10, %v114_v16 }
  0xa9   :  { %118 = vst [vmem:[%s252_s3 + $0x8] sm:$0xff] %v110_v17 }
  0xaa   :  { %120 = vst [vmem:[%s252_s3 + $0x18] sm:$0xff] %v115_v18 }

// kernel: gmlp_image_classifier.5
= control target key start
LH: loop header
LB: loop body
LE: loop exit
PB: predicated region body
PF: predicated region fallthrough
CT: control target
= control target key end

     0   :  { %v221_v1 = vmov 16.0   ;;  %s285_s0 = inlined_call_operand.vmem [shape: f32[2,16,128], index: 0, kind: input, shape index: {}]   ;;  %s286_s1 = inlined_call_operand.vmem [shape: bf16[128,128], index: 1, kind: input, shape index: {}]   ;;  %s287_s2 = inlined_call_operand.vmem [shape: f32[1,128], index: 2, kind: input, shape index: {}]   ;;  %s288_s3 = inlined_call_operand.hbm [shape: f32[2,128], index: 3, kind: output, shape index: {}]  }
   0x1   :  { %v189_v0 = vld [vmem:[%s286_s1 + $0x38] sm:$0xff]  ;;  %193 = vrcp.f32 %v221_v1  ;;  %v188_v2 = vld [vmem:[%s286_s1 + $0x30] sm:$0xff]  ;;  %v15_v3 = vld [vmem:[%s285_s0] sm:$0xff] }
   0x2   :  { %120 = vmatpush.bf16.msra.mxu0 %v189_v0  ;;  %v16_v4 = vld [vmem:[%s285_s0 + $0x8] sm:$0xff]  ;;  %v17_v5 = vld [vmem:[%s285_s0 + $0x10] sm:$0xff]  ;;  %v18_v6 = vld [vmem:[%s285_s0 + $0x18] sm:$0xff] }
   0x3   :  { %v19_v7 = vadd.f32 %v16_v4, %v15_v3  ;;  %v26_v8 = vadd.f32 %v18_v6, %v17_v5 }
   0x4   :  { %8 = vsyncpa [#allocation3], 0  ;;  %v187_v9 = vld [vmem:[%s286_s1 + $0x28] sm:$0xff]  ;;  %v186_v16 = vld [vmem:[%s286_s1 + $0x20] sm:$0xff]  ;;  %vm68_vm1 = vcmask 1041409   ;;  %s222_s10 = smov [#allocation2]  }
   0x5   :  { %v20_v10 = vrot.slane %v19_v7, 4  ;;  %v27_v11 = vrot.slane %v26_v8, 4  ;;  %v185_v23 = vld [vmem:[%s286_s1 + $0x18] sm:$0xff]  ;;  %v184_v30 = vld [vmem:[%s286_s1 + $0x10] sm:$0xff]  ;;  %v183_v35 = vld [vmem:[%s286_s1 + $0x8] sm:$0xff]  ;;  %s139_s11 = sshll.u32 %s222_s10, 4  ;;  %s140_s11 = int_to_ptr.vmem [resolvable:$true] %s139_s11 }
   0x6   :  { %121 = vmatpush.bf16.msra.mxu0 %v188_v2  ;;  %v182_v38 = vld [vmem:[%s286_s1] sm:$0xff]  ;;  %s141_s14 = sshll.u32 %s288_s3, 4  ;;  %s142_s14 = int_to_ptr.hbm [resolvable:$true] %s141_s14 }
   0x7   :  { %v194_v12 = vpop.eup %193  ;;  %v21_v13 = vadd.f32 %v20_v10, %v19_v7  ;;  %v28_v14 = vadd.f32 %v27_v11, %v26_v8  ;;  %v192_v41 = vld [vmem:[%s287_s2] ss:$0 sm:$0xff] }
   0x8   :  { %v34_v15 = vmul.f32 16.0, %v194_v12  ;;  %vm38_vm0 = vweird.f32 %v194_v12 }
   0x9   :  { %v22_v17 = vrot.slane %v21_v13, 2  ;;  %v29_v18 = vrot.slane %v28_v14, 2 }
   0xa   :  { %122 = vmatpush.bf16.msra.mxu0 %v187_v9  ;;  %v35_v19 = vsub.f32 1.0, %v34_v15 }
   0xb   :  { %v23_v20 = vadd.f32 %v22_v17, %v21_v13  ;;  %v30_v21 = vadd.f32 %v29_v18, %v28_v14 }
   0xc   :  { %v36_v22 = vmul.f32 %v194_v12, %v35_v19 }
   0xd   :  { %v24_v24 = vrot.slane %v23_v20, 1  ;;  %v31_v25 = vrot.slane %v30_v21, 1 }
   0xe   :  { %123 = vmatpush.bf16.msra.mxu0 %v186_v16  ;;  %v37_v26 = vadd.f32 %v194_v12, %v36_v22 }
   0xf   :  { %v25_v27 = vadd.f32 %v24_v24, %v23_v20  ;;  %v32_v28 = vadd.f32 %v31_v25, %v30_v21 }
  0x10   :  { %v39_v29 = vsel %vm38_vm0, %v194_v12, %v37_v26 }
  0x11   :  { %v40_v31 = vmul.f32 %v39_v29, %v25_v27  ;;  %v41_v32 = vmul.f32 %v39_v29, %v32_v28 }
  0x12   :  { %124 = vmatpush.bf16.msra.mxu0 %v185_v23 }
  0x13   :  { %v42_v33 = vpack.c.bf16 %v40_v31, %v40_v31  ;;  %v43_v34 = vpack.c.bf16 %v41_v32, %v41_v32 }
  0x15   :  { %v66_v36 = vunpack.c.l.b16 %v42_v33  ;;  %v67_v37 = vunpack.c.l.b16 %v43_v34 }
  0x16   :  { %125 = vmatpush.bf16.msra.mxu0 %v184_v30 }
  0x17   :  { %v69_v39 = vsel %vm68_vm1, %v67_v37, %v66_v36 }
  0x18   :  { %v70_v40 = vpack.c.b16 %v69_v39, %v69_v39 }
  0x1a   :  { %126 = vmatpush.bf16.msra.mxu0 %v183_v35 }
  0x1e   :  { %127 = vmatpush.bf16.msra.mxu0 %v182_v38 }
  0x21   :  { %128 = vmatmul.bf16.vlgmr.msra.gmra.mxu0 %v70_v40 }
  0x9e   :  { %v129_v42 = vpop.f32.mrf.mxu0 }
  0x9f   :  { %v130_v43 = vadd.f32 %v192_v41, %v129_v42 }
  0xa1   :  { %133 = vst [vmem:[#allocation2] sm:$0x3] %v130_v43 }
  0xa2   :  { %144 = dma.vmem_to_hbm [thread:$0]  %s140_s11, 32, %s142_s14, [#allocation3]  }
  0xa6   :  { %v131_v44 = vpop.f32.mrf.mxu0 }
  0xa7   :  { %219 = dma.done.wait [#allocation3], 32  }
  0xa8   :  { %220 = vsyncadd [#allocation3], 4294967264 }
  0xa9   :  { %149 = vsyncpa [#allocation3], 1 }

// kernel: gmlp_image_classifier.4
= control target key start
LH: loop header
LB: loop body
LE: loop exit
PB: predicated region body
PF: predicated region fallthrough
CT: control target
= control target key end

     0   :  { %s2171_s17 = smov 0   ;;  %s2173_s18 = smov 0   ;;  %s2541_s0 = inlined_call_operand.vmem [shape: f32[32,128], index: 0, kind: input, shape index: {}]   ;;  %s2542_s1 = inlined_call_operand.vmem [shape: f32[2,1,128], index: 1, kind: input, shape index: {}]   ;;  %s2543_s2 = inlined_call_operand.vmem [shape: f32[2,1,128], index: 2, kind: input, shape index: {}]   ;;  %s2544_s3 = inlined_call_operand.vmem [shape: bf16[2,128,512], index: 3, kind: input, shape index: {}]   ;;  %s2545_s4 = inlined_call_operand.vmem [shape: f32[2,1,512], index: 4, kind: input, shape index: {}]   ;;  %s2546_s5 = inlined_call_operand.vmem [shape: f32[2,1,256], index: 5, kind: input, shape index: {}]   ;;  %s2547_s6 = inlined_call_operand.vmem [shape: f32[2,1,256], index: 6, kind: input, shape index: {}]   ;;  %s2548_s7 = inlined_call_operand.vmem [shape: bf16[2,32,32], index: 7, kind: input, shape index: {}]   ;;  %s2549_s8 = inlined_call_operand.vmem [shape: f32[2,32,1], index: 8, kind: input, shape index: {}]   ;;  %s2550_s9 = inlined_call_operand.vmem [shape: bf16[2,256,128], index: 9, kind: input, shape index: {}]   ;;  %s2551_s10 = inlined_call_operand.vmem [shape: f32[2,1,128], index: 10, kind: input, shape index: {}]   ;;  %s2552_s11 = inlined_call_operand.vmem [shape: f32[32,128], index: 11, kind: output, shape index: {}]  }
   0x1   :  { %2554 = sst [smem:[#allocation5_spill]] %s2544_s3  ;;  %s2175_s19 = smov 0  }
   0x2   :  { %2555 = sst [smem:[#allocation6_spill]] %s2545_s4 }
   0x3   :  { %2556 = sst [smem:[#allocation7_spill]] %s2546_s5 }
   0x4 LB: > { %2557 = sst [smem:[#allocation3_spill]] %s2102_s18  ;;  %s30_s20 = sadd.s32 1, %s2102_s18  ;;  %s2106_s19 = sphi %s2175_s19, %s21_s19   ;;  %s2102_s18 = sphi %s2173_s18, %s2565_s18   ;;  %s2098_s17 = sphi %s2171_s17, %s2564_s17  }
   0x5   : > { %p1719_p0 = scmp.ge.s32.totalorder %s2106_s19, 1  ;;  %p31_p1 = scmp.ge.s32.totalorder %s30_s20, 2 }
   0x6   : > { %p441_p2 = scmp.lt.s32.totalorder %s2106_s19, 3 }
   0x7   : > { %s2567_s20 = smov (%p31_p1, %s30_s20), 0 }
   0x8   : > { %2558 = sst [smem:[#allocation4_spill]] %s2567_s20  ;;  %p442_p3 = pnand %p1719_p0, %p441_p2 }
   0x9   : > { %p528_p4 = scmp.lt.s32.totalorder (!%p442_p3), %s2098_s17, 1  ;;  %s2559_s3 = sld [smem:[#allocation5_spill]] (!%p442_p3) }
   0xa   : > { %445 = sbr.rel (%p442_p3) target bundleno = 1084 (0x43c), region = 64  ;;  %s2560_s4 = sld [smem:[#allocation6_spill]] (!%p442_p3) }
   0xb   : > { %s2561_s5 = sld [smem:[#allocation7_spill]] (!%p442_p3)  ;;  %p1731_p5 = scmp.ne.s32.totalorder (!%p442_p3), %s2098_s17, 0 }
   0xf   : > { %s2193_s21 = scalar_select %p528_p4, %s2098_s17, 1 }
  0x11   : > { %s1941_s28 = sshll.u32 %s2193_s21, 8  ;;  %s1722_s29 = sshll.u32 %s2193_s21, 2 }
  0x12   : > { %s2208_s13 = scalar_lea.vmem %s2559_s3, %s1941_s28  ;;  %s2213_s16 = scalar_lea.vmem %s2560_s4, %s1722_s29 }
  0x13   : > { %s1723_s22 = sshll.u32 %s2193_s21, 1  ;;  %s1942_s23 = sshll.u32 %s2193_s21, 4 }
  0x14   : > { %s2220_s18 = scalar_lea.vmem %s2561_s5, %s1723_s22  ;;  %s2225_s27 = scalar_lea.vmem %s2547_s6, %s1723_s22 }
  0x15   : > { %s2230_s12 = scalar_lea.vmem %s2548_s7, %s1942_s23  ;;  %s1943_s14 = sshll.u32 %s2193_s21, 5 }
  0x16   : > { %s2236_s3 = scalar_lea.vmem %s2549_s8, %s1943_s14  ;;  %s1944_s4 = sshll.u32 %s2193_s21, 7 }
  0x17   : > { %s2242_s5 = scalar_lea.vmem %s2550_s9, %s1944_s4  ;;  %s568_s26 = scalar_lea.vmem %s2551_s10, %s2193_s21 }
  0x18   : > { %579 = sbr.rel (%p1731_p5) target bundleno = 34 (0x22), region = 68 }
  0x1d   : > { %v580_v0 = vld [vmem:[%s2541_s0] sm:$0xff]  ;;  %v581_v1 = vld [vmem:[%s2541_s0 + $0x8] sm:$0xff]  ;;  %v582_v2 = vld [vmem:[%s2541_s0 + $0x10] sm:$0xff] }
  0x1e   : > { %584 = vst [vmem:[#allocation2 + $0x10] sm:$0xff] %v580_v0  ;;  %v583_v3 = vld [vmem:[%s2541_s0 + $0x18] sm:$0xff] }
  0x1f   : > { %585 = vst [vmem:[#allocation2] sm:$0xff] %v581_v1 }
  0x20   : > { %586 = vst [vmem:[#allocation2 + $0x18] sm:$0xff] %v582_v2 }
  0x21   : > { %587 = vst [vmem:[#allocation2 + $0x8] sm:$0xff] %v583_v3 }
  0x22 PF: > { %v2108_v8 = vmov 128.0   ;;  %v1846_v31 = vld [vmem:[%s2208_s13 + $0xe0] sm:$0xf]  ;;  %v1975_v32 = vld [vmem:[%s2208_s13 + $0xec] sm:$0xf0]  ;;  %s2562_s25 = scalar_lea.vmem %s2542_s1, %s2193_s21  ;;  %s2563_s30 = scalar_lea.vmem %s2543_s2, %s2193_s21 }
  0x23   : > { %2028 = vrcp.f32 %v2108_v8  ;;  %v1973_v33 = vld [vmem:[%s2208_s13 + $0xe4] sm:$0xf]  ;;  %v1847_v34 = vor.u32 %v1975_v32, %v1846_v31  ;;  %v1848_v35 = vld [vmem:[%s2208_s13 + $0xf0] sm:$0xf0]  ;;  %v1854_v36 = vld [vmem:[%s2208_s13 + $0xe8] sm:$0xf] }
  0x24   : > { %v1976_v37 = vld [vmem:[%s2208_s13 + $0xf4] sm:$0xf0]  ;;  %v1851_v38 = vor.u32 %v1973_v33, %v1848_v35  ;;  %v1974_v40 = vld [vmem:[%s2208_s13 + $0xec] sm:$0xf]  ;;  %v1856_v41 = vld [vmem:[%s2208_s13 + $0xf8] sm:$0xf0] }
  0x25   : > { %v588_v5 = vld [vmem:[#allocation2 + $0x10] sm:$0xff]  ;;  %v1855_v39 = vor.u32 %v1976_v37, %v1854_v36  ;;  %899 = vmatpush.bf16.msra.mxu0 %v1847_v34  ;;  %v1859_v42 = vor.u32 %v1974_v40, %v1856_v41  ;;  %v1830_v43 = vld [vmem:[%s2208_s13 + $0xc0] sm:$0xf]  ;;  %v1969_v45 = vld [vmem:[%s2208_s13 + $0xc4] sm:$0xf]  ;;  %p1936_p6 = scmp.ne.s32.totalorder %s2098_s17, 1 }
  0x26   : > { %594 = vadd.xlane.f32.xlu0 %v588_v5  ;;  %v589_v7 = vld [vmem:[#allocation2] sm:$0xff]  ;;  %918 = vmatpush.bf16.msra.mxu1 %v1851_v38  ;;  %v1971_v44 = vld [vmem:[%s2208_s13 + $0xcc] sm:$0xf0]  ;;  %v1832_v47 = vld [vmem:[%s2208_s13 + $0xd0] sm:$0xf0] }
  0x27   : > { %v590_v4 = vld [vmem:[#allocation2 + $0x18] sm:$0xff]  ;;  %937 = vmatpush.bf16.msra.mxu2 %v1855_v39  ;;  %956 = vmatpush.bf16.msra.mxu3 %v1859_v42  ;;  %v1831_v46 = vor.u32 %v1971_v44, %v1830_v43  ;;  %v1838_v48 = vld [vmem:[%s2208_s13 + $0xc8] sm:$0xf]  ;;  %v1835_v50 = vor.u32 %v1969_v45, %v1832_v47  ;;  %v1970_v52 = vld [vmem:[%s2208_s13 + $0xcc] sm:$0xf] }
  0x28   : > { %598 = vadd.xlane.f32.xlu1 %v590_v4  ;;  %v591_v6 = vld [vmem:[#allocation2 + $0x8] sm:$0xff]  ;;  %v1972_v49 = vld [vmem:[%s2208_s13 + $0xd4] sm:$0xf0]  ;;  %v1840_v53 = vld [vmem:[%s2208_s13 + $0xd8] sm:$0xf0] }
  0x29   : > { %v2029_v9 = vpop.eup %2028  ;;  %v1839_v51 = vor.u32 %v1972_v49, %v1838_v48  ;;  %900 = vmatpush.bf16.msra.mxu0 %v1831_v46  ;;  %v1843_v54 = vor.u32 %v1970_v52, %v1840_v53  ;;  %v1814_v55 = vld [vmem:[%s2208_s13 + $0xa0] sm:$0xf]  ;;  %v1967_v56 = vld [vmem:[%s2208_s13 + $0xac] sm:$0xf0]  ;;  %v1965_v57 = vld [vmem:[%s2208_s13 + $0xa4] sm:$0xf] }
  0x2a   : > { %v603_v10 = vmul.f32 128.0, %v2029_v9  ;;  %vm607_vm0 = vweird.f32 %v2029_v9  ;;  %919 = vmatpush.bf16.msra.mxu1 %v1835_v50  ;;  %v1815_v58 = vor.u32 %v1967_v56, %v1814_v55  ;;  %v1816_v59 = vld [vmem:[%s2208_s13 + $0xb0] sm:$0xf0]  ;;  %v1822_v60 = vld [vmem:[%s2208_s13 + $0xa8] sm:$0xf] }
  0x2b   : > { %938 = vmatpush.bf16.msra.mxu2 %v1839_v51  ;;  %957 = vmatpush.bf16.msra.mxu3 %v1843_v54  ;;  %v1968_v61 = vld [vmem:[%s2208_s13 + $0xb4] sm:$0xf0]  ;;  %v1819_v62 = vor.u32 %v1965_v57, %v1816_v59  ;;  %v1966_v0 = vld [vmem:[%s2208_s13 + $0xac] sm:$0xf]  ;;  %v1824_v1 = vld [vmem:[%s2208_s13 + $0xb8] sm:$0xf0] }
  0x2c   : > { %v604_v11 = vsub.f32 1.0, %v603_v10  ;;  %v1823_v63 = vor.u32 %v1968_v61, %v1822_v60  ;;  %v1827_v2 = vor.u32 %v1966_v0, %v1824_v1  ;;  %v1798_v3 = vld [vmem:[%s2208_s13 + $0x80] sm:$0xf]  ;;  %v1806_v8 = vld [vmem:[%s2208_s13 + $0x88] sm:$0xf] }
  0x2d   : > { %901 = vmatpush.bf16.msra.mxu0 %v1815_v58  ;;  %v1766_v32 = vld [vmem:[%s2208_s13 + $0x40] sm:$0xf]  ;;  %v1955_v33 = vld [vmem:[%s2208_s13 + $0x4c] sm:$0xf0]  ;;  %v1953_v34 = vld [vmem:[%s2208_s13 + $0x44] sm:$0xf] }
  0x2e   : > { %596 = vadd.xlane.f32.xlu0 %v589_v7  ;;  %v605_v12 = vmul.f32 %v2029_v9, %v604_v11  ;;  %920 = vmatpush.bf16.msra.mxu1 %v1819_v62  ;;  %v1767_v35 = vor.u32 %v1955_v33, %v1766_v32  ;;  %v1768_v36 = vld [vmem:[%s2208_s13 + $0x50] sm:$0xf0]  ;;  %v1774_v37 = vld [vmem:[%s2208_s13 + $0x48] sm:$0xf]  ;;  %v1956_v38 = vld [vmem:[%s2208_s13 + $0x54] sm:$0xf0] }
  0x2f   : > { %939 = vmatpush.bf16.msra.mxu2 %v1823_v63  ;;  %958 = vmatpush.bf16.msra.mxu3 %v1827_v2  ;;  %v1771_v39 = vor.u32 %v1953_v34, %v1768_v36  ;;  %v1775_v40 = vor.u32 %v1956_v38, %v1774_v37  ;;  %v1954_v41 = vld [vmem:[%s2208_s13 + $0x4c] sm:$0xf]  ;;  %v1776_v42 = vld [vmem:[%s2208_s13 + $0x58] sm:$0xf0]  ;;  %v1750_v44 = vld [vmem:[%s2208_s13 + $0x20] sm:$0xf] }
  0x30   : > { %600 = vadd.xlane.f32.xlu1 %v591_v6  ;;  %v606_v13 = vadd.f32 %v2029_v9, %v605_v12  ;;  %v1962_v12 = vld [vmem:[%s2208_s13 + $0x8c] sm:$0xf]  ;;  %v1779_v43 = vor.u32 %v1954_v41, %v1776_v42  ;;  %v1951_v45 = vld [vmem:[%s2208_s13 + $0x2c] sm:$0xf0]  ;;  %v1949_v46 = vld [vmem:[%s2208_s13 + $0x24] sm:$0xf] }
  0x31   : > { %v1751_v47 = vor.u32 %v1951_v45, %v1750_v44  ;;  %v1752_v48 = vld [vmem:[%s2208_s13 + $0x30] sm:$0xf0]  ;;  %v1758_v49 = vld [vmem:[%s2208_s13 + $0x28] sm:$0xf]  ;;  %v1952_v50 = vld [vmem:[%s2208_s13 + $0x34] sm:$0xf0] }
  0x32   : > { %v2261_v14 = vsel %vm607_vm0, %v2029_v9, %v606_v13  ;;  %v1964_v9 = vld [vmem:[%s2208_s13 + $0x94] sm:$0xf0]  ;;  %v1808_v13 = vld [vmem:[%s2208_s13 + $0x98] sm:$0xf0]  ;;  %v1755_v52 = vor.u32 %v1949_v46, %v1752_v48  ;;  %v1759_v53 = vor.u32 %v1952_v50, %v1758_v49  ;;  %v1950_v54 = vld [vmem:[%s2208_s13 + $0x2c] sm:$0xf] }
  0x33   : > { %v1807_v11 = vor.u32 %v1964_v9, %v1806_v8  ;;  %v1760_v55 = vld [vmem:[%s2208_s13 + $0x38] sm:$0xf0]  ;;  %v1734_v56 = vld [vmem:[%s2208_s13] sm:$0xf]  ;;  %v1947_v60 = vld [vmem:[%s2208_s13 + $0xc] sm:$0xf0] }
  0x34   : > { %v1763_v59 = vor.u32 %v1950_v54, %v1760_v55  ;;  %v1945_v61 = vld [vmem:[%s2208_s13 + $0x4] sm:$0xf]  ;;  %v1736_v62 = vld [vmem:[%s2208_s13 + $0x10] sm:$0xf0]  ;;  %v1735_v63 = vor.u32 %v1947_v60, %v1734_v56  ;;  %v1742_v1 = vld [vmem:[%s2208_s13 + $0x8] sm:$0xf] }
  0x35   : > { %940 = vmatpush.bf16.msra.mxu2 %v1807_v11  ;;  %v1739_v0 = vor.u32 %v1945_v61, %v1736_v62  ;;  %v1948_v2 = vld [vmem:[%s2208_s13 + $0x14] sm:$0xf0]  ;;  %v2366_v62 = vld [vmem:[%s2213_s16] sm:$0xf] }
  0x99   : > { %v595_v16 = vpop.xlane.xlu0 %594 }
  0x9a   : > { %v609_v18 = vmul.f32 %v2261_v14, %v595_v16  ;;  %v1782_v16 = vld [vmem:[%s2208_s13 + $0x60] sm:$0xf] }
  0x9b   : > { %v599_v15 = vpop.xlane.xlu1 %598 }
  0x9c   : > { %v611_v17 = vmul.f32 %v2261_v14, %v599_v15  ;;  %v2267_v20 = vsub.f32 %v588_v5, %v609_v18  ;;  %v1961_v5 = vld [vmem:[%s2208_s13 + $0x84] sm:$0xf]  ;;  %v1811_v15 = vor.u32 %v1962_v12, %v1808_v13 }
  0x9d   : > { %v1957_v18 = vld [vmem:[%s2208_s13 + $0x64] sm:$0xf] }
  0x9e   : > { %v2265_v19 = vsub.f32 %v590_v4, %v611_v17  ;;  %v617_v22 = vmul.f32 %v2267_v20, %v2267_v20  ;;  %v1963_v4 = vld [vmem:[%s2208_s13 + $0x8c] sm:$0xf0]  ;;  %959 = vmatpush.bf16.msra.mxu3 %v1811_v15 }
  0x9f   : > { %v1959_v17 = vld [vmem:[%s2208_s13 + $0x6c] sm:$0xf0] }
  0xa0   : > { %v619_v21 = vmul.f32 %v2265_v19, %v2265_v19  ;;  %621 = vadd.xlane.f32.xlu2 %v617_v22  ;;  %v1784_v22 = vld [vmem:[%s2208_s13 + $0x70] sm:$0xf0] }
  0xa1   : > { %v597_v24 = vpop.xlane.xlu0 %596 }
  0xa2   : > { %625 = vadd.xlane.f32.xlu0 %v619_v21  ;;  %v610_v26 = vmul.f32 %v2261_v14, %v597_v24  ;;  %v1783_v21 = vor.u32 %v1959_v17, %v1782_v16  ;;  %v1960_v24 = vld [vmem:[%s2208_s13 + $0x74] sm:$0xf0] }
  0xa3   : > { %v601_v23 = vpop.xlane.xlu1 %600 }
  0xa4   : > { %v612_v25 = vmul.f32 %v2261_v14, %v601_v23  ;;  %v2277_v28 = vsub.f32 %v589_v7, %v610_v26  ;;  %v1800_v7 = vld [vmem:[%s2208_s13 + $0x90] sm:$0xf0]  ;;  %v1790_v23 = vld [vmem:[%s2208_s13 + $0x68] sm:$0xf] }
  0xa5   : > { %v1803_v10 = vor.u32 %v1961_v5, %v1800_v7  ;;  %v1791_v26 = vor.u32 %v1960_v24, %v1790_v23  ;;  %v1743_v5 = vor.u32 %v1948_v2, %v1742_v1 }
  0xa6   : > { %v2275_v27 = vsub.f32 %v591_v6, %v612_v25  ;;  %v618_v30 = vmul.f32 %v2277_v28, %v2277_v28  ;;  %v1799_v6 = vor.u32 %v1963_v4, %v1798_v3  ;;  %v1787_v25 = vor.u32 %v1957_v18, %v1784_v22  ;;  %v1946_v3 = vld [vmem:[%s2208_s13 + $0xc] sm:$0xf] }
  0xa7   : > { %921 = vmatpush.bf16.msra.mxu1 %v1803_v10  ;;  %941 = vmatpush.bf16.msra.mxu2 %v1791_v26 }
  0xa8   : > { %v620_v29 = vmul.f32 %v2275_v27, %v2275_v27  ;;  %623 = vadd.xlane.f32.xlu2 %v618_v30  ;;  %902 = vmatpush.bf16.msra.mxu0 %v1799_v6  ;;  %v1792_v30 = vld [vmem:[%s2208_s13 + $0x78] sm:$0xf0] }
  0xa9   : > { %v1744_v6 = vld [vmem:[%s2208_s13 + $0x18] sm:$0xf0] }
  0xaa   : > { %627 = vadd.xlane.f32.xlu1 %v620_v29  ;;  %v1958_v29 = vld [vmem:[%s2208_s13 + $0x6c] sm:$0xf]  ;;  %v1747_v8 = vor.u32 %v1946_v3, %v1744_v6 }
  0xab   : > { %v1795_v31 = vor.u32 %v1958_v29, %v1792_v30  ;;  %922 = vmatpush.bf16.msra.mxu1 %v1787_v25  ;;  %942 = vmatpush.bf16.msra.mxu2 %v1775_v40  ;;  %v2025_v40 = vld [vmem:[%s2562_s25] ss:$0 sm:$0xff] }
  0xac   : > { %903 = vmatpush.bf16.msra.mxu0 %v1783_v21 }
  0xad   : > { %960 = vmatpush.bf16.msra.mxu3 %v1795_v31 }
  0xaf   : > { %923 = vmatpush.bf16.msra.mxu1 %v1771_v39  ;;  %943 = vmatpush.bf16.msra.mxu2 %v1759_v53 }
  0xb0   : > { %904 = vmatpush.bf16.msra.mxu0 %v1767_v35 }
  0xb1   : > { %961 = vmatpush.bf16.msra.mxu3 %v1779_v43 }
  0xb3   : > { %924 = vmatpush.bf16.msra.mxu1 %v1755_v52  ;;  %944 = vmatpush.bf16.msra.mxu2 %v1743_v5 }
  0xb4   : > { %905 = vmatpush.bf16.msra.mxu0 %v1751_v47  ;;  %v2026_v47 = vld [vmem:[%s2563_s30] ss:$0 sm:$0xff] }
  0xb5   : > { %962 = vmatpush.bf16.msra.mxu3 %v1763_v59 }
  0xb7   : > { %925 = vmatpush.bf16.msra.mxu1 %v1739_v0  ;;  %v734_v0 = vperm.slane %v2366_v62, 3 }
  0xb8   : > { %906 = vmatpush.bf16.msra.mxu0 %v1735_v63  ;;  %v733_v63 = vperm.slane %v2366_v62, 2 }
  0xb9   : > { %963 = vmatpush.bf16.msra.mxu3 %v1747_v8 }
 0x113   : > { %v622_v51 = vpop.xlane.xlu2 %621 }
 0x114   : > { %v629_v57 = vmul.f32 %v622_v51, %v2261_v14 }
 0x115   : > { %v626_v58 = vpop.xlane.xlu0 %625 }
 0x116   : > { %v633_v4 = vadd.f32 1e-05, %v629_v57  ;;  %v631_v7 = vmul.f32 %v626_v58, %v2261_v14 }
 0x118   : > { %2030 = vrsqrt.f32 %v633_v4  ;;  %v635_v9 = vadd.f32 1e-05, %v631_v7  ;;  %vm643_vm2 = vweird.f32 %v633_v4 }
 0x11a   : > { %2032 = vrsqrt.f32 %v635_v9  ;;  %vm663_vm9 = vweird.f32 %v635_v9 }
 0x11b   : > { %v624_v11 = vpop.xlane.xlu2 %623 }
 0x11c   : > { %v630_v13 = vmul.f32 %v624_v11, %v2261_v14 }
 0x11d   : > { %v628_v10 = vpop.xlane.xlu1 %627 }
 0x11e   : > { %v632_v12 = vmul.f32 %v628_v10, %v2261_v14  ;;  %v2031_v15 = vpop.eup %2030  ;;  %v634_v17 = vadd.f32 1e-05, %v630_v13 }
 0x11f   : > { %v638_v18 = vmul.f32 %v2031_v15, %v633_v4  ;;  %vm644_vm1 = vweird.f32 %v2031_v15 }
 0x120   : > { %v636_v16 = vadd.f32 1e-05, %v632_v12  ;;  %v2033_v23 = vpop.eup %2032  ;;  %vm645_vm3 = vmor %vm643_vm2, %vm644_vm1  ;;  %vm653_vm5 = vweird.f32 %v634_v17 }
 0x121   : > { %v639_v21 = vmul.f32 %v2031_v15, %v638_v18  ;;  %v658_v31 = vmul.f32 %v2033_v23, %v635_v9  ;;  %vm664_vm10 = vweird.f32 %v2033_v23 }
 0x122   : > { %2034 = vrsqrt.f32 %v636_v16  ;;  %vm673_vm7 = vweird.f32 %v636_v16  ;;  %vm665_vm12 = vmor %vm663_vm9, %vm664_vm10  ;;  %vm1296_vm10 = vcmask 261120  }
 0x123   : > { %2036 = vrsqrt.f32 %v634_v17  ;;  %v640_v22 = vmul.f32 0.5, %v639_v21  ;;  %v659_v35 = vmul.f32 %v2033_v23, %v658_v31 }
 0x125   : > { %v641_v24 = vsub.f32 1.5, %v640_v22  ;;  %v660_v41 = vmul.f32 0.5, %v659_v35 }
 0x127   : > { %v642_v30 = vmul.f32 %v2031_v15, %v641_v24 }
 0x128   : > { %v2035_v25 = vpop.eup %2034 }
 0x129   : > { %v2037_v26 = vpop.eup %2036  ;;  %v668_v29 = vmul.f32 %v2035_v25, %v636_v16  ;;  %v646_v34 = vsel %vm645_vm3, %v2031_v15, %v642_v30  ;;  %vm674_vm8 = vweird.f32 %v2035_v25 }
 0x12a   : > { %v648_v32 = vmul.f32 %v2037_v26, %v634_v17  ;;  %vm654_vm4 = vweird.f32 %v2037_v26  ;;  %v677_v39 = vmul.f32 %v646_v34, %v2267_v20  ;;  %v661_v20 = vsub.f32 1.5, %v660_v41  ;;  %vm675_vm11 = vmor %vm673_vm7, %vm674_vm8 }
 0x12b   : > { %v669_v14 = vmul.f32 %v2035_v25, %v668_v29  ;;  %vm655_vm6 = vmor %vm653_vm5, %vm654_vm4 }
 0x12c   : > { %v649_v33 = vmul.f32 %v2037_v26, %v648_v32  ;;  %v684_v46 = vmul.f32 %v2025_v40, %v677_v39  ;;  %v662_v52 = vmul.f32 %v2033_v23, %v661_v20 }
 0x12d   : > { %v670_v37 = vmul.f32 0.5, %v669_v14 }
 0x12e   : > { %v650_v36 = vmul.f32 0.5, %v649_v33  ;;  %v691_v50 = vadd.f32 %v2026_v47, %v684_v46  ;;  %v666_v54 = vsel %vm665_vm12, %v2033_v23, %v662_v52 }
 0x12f   : > { %v671_v43 = vsub.f32 1.5, %v670_v37  ;;  %v679_v56 = vmul.f32 %v666_v54, %v2265_v19 }
 0x130   : > { %v651_v38 = vsub.f32 1.5, %v650_v36 }
 0x131   : > { %v672_v49 = vmul.f32 %v2035_v25, %v671_v43  ;;  %v686_v58 = vmul.f32 %v2025_v40, %v679_v56 }
 0x132   : > { %v652_v42 = vmul.f32 %v2037_v26, %v651_v38 }
 0x133   : > { %v693_v60 = vadd.f32 %v2026_v47, %v686_v58 }
 0x134   : > { %v656_v44 = vsel %vm655_vm6, %v2037_v26, %v652_v42 }
 0x135   : > { %v678_v45 = vmul.f32 %v656_v44, %v2277_v28  ;;  %v676_v28 = vsel %vm675_vm11, %v2035_v25, %v672_v49 }
 0x136   : > { %v680_v55 = vmul.f32 %v676_v28, %v2275_v27 }
 0x137   : > { %v685_v48 = vmul.f32 %v2025_v40, %v678_v45 }
 0x138   : > { %v687_v57 = vmul.f32 %v2025_v40, %v680_v55 }
 0x139   : > { %v692_v51 = vadd.f32 %v2026_v47, %v685_v48 }
 0x13a   : > { %v694_v59 = vadd.f32 %v2026_v47, %v687_v57 }
 0x13b   : > { %v695_v53 = vpack.c.bf16 %v692_v51, %v691_v50 }
 0x13c   : > { %v696_v61 = vpack.c.bf16 %v694_v59, %v693_v60 }
 0x13d   : > { %907 = vmatmul.bf16.vlgmr.msra.gmra.mxu0 %v695_v53  ;;  %926 = vmatmul.bf16.vlgmr.msra.gmra.mxu1 %v695_v53 }
 0x13e   : > { %945 = vmatmul.bf16.vlgmr.msra.gmra.mxu2 %v695_v53  ;;  %964 = vmatmul.bf16.vlgmr.msra.gmra.mxu3 %v695_v53 }
 0x14d   : > { %912 = vmatmul.bf16.gmra.mxu0 %v696_v61  ;;  %931 = vmatmul.bf16.gmra.mxu1 %v696_v61 }
 0x14e   : > { %950 = vmatmul.bf16.gmra.mxu2 %v696_v61  ;;  %969 = vmatmul.bf16.gmra.mxu3 %v696_v61 }
 0x1c1   : > { %v946_v1 = vpop.f32.mrf.mxu2  ;;  %v965_v2 = vpop.f32.mrf.mxu3 }
 0x1c2   : > { %v947_v27 = vadd.f32 %v946_v1, %v733_v63  ;;  %v966_v3 = vadd.f32 %v965_v2, %v734_v0 }
 0x1c4   : > { %v993_v19 = vmul.f32 0.044715, %v947_v27  ;;  %v994_v4 = vmul.f32 0.044715, %v966_v3  ;;  %v977_v34 = vmul.f32 0.5, %v947_v27  ;;  %v978_v37 = vmul.f32 0.5, %v966_v3 }
 0x1c6   : > { %v1009_v5 = vmul.f32 %v993_v19, %v947_v27  ;;  %v1010_v6 = vmul.f32 %v994_v4, %v966_v3 }
 0x1c8   : > { %v1025_v7 = vmul.f32 %v1009_v5, %v947_v27  ;;  %v1026_v8 = vmul.f32 %v1010_v6, %v966_v3 }
 0x1c9   : > { %v948_v9 = vpop.f32.mrf.mxu2  ;;  %v967_v10 = vpop.f32.mrf.mxu3 }
 0x1ca   : > { %v2370_v11 = vadd.f32 %v948_v9, %v733_v63  ;;  %v2372_v12 = vadd.f32 %v967_v10, %v734_v0  ;;  %v1041_v13 = vadd.f32 %v1025_v7, %v947_v27  ;;  %v1042_v15 = vadd.f32 %v1026_v8, %v966_v3 }
 0x1cc   : > { %v997_v16 = vmul.f32 0.044715, %v2370_v11  ;;  %v1057_v17 = vmul.f32 0.7978846, %v1041_v13  ;;  %v998_v18 = vmul.f32 0.044715, %v2372_v12 }
 0x1cd   : > { %v1058_v21 = vmul.f32 0.7978846, %v1042_v15 }
 0x1ce   : > { %2038 = vtanh.f32 %v1057_v17  ;;  %v1013_v22 = vmul.f32 %v997_v16, %v2370_v11  ;;  %v1014_v25 = vmul.f32 %v998_v18, %v2372_v12  ;;  %v981_v18 = vmul.f32 0.5, %v2370_v11 }
 0x1cf   : > { %2040 = vtanh.f32 %v1058_v21  ;;  %v982_v21 = vmul.f32 0.5, %v2372_v12 }
 0x1d0   : > { %v1029_v30 = vmul.f32 %v1013_v22, %v2370_v11  ;;  %v1030_v36 = vmul.f32 %v1014_v25, %v2372_v12 }
 0x1d1   : > { %v951_v23 = vpop.f32.mrf.mxu2  ;;  %v970_v24 = vpop.f32.mrf.mxu3 }
 0x1d2   : > { %v952_v26 = vadd.f32 %v951_v23, %v733_v63  ;;  %v971_v29 = vadd.f32 %v970_v24, %v734_v0  ;;  %v1045_v42 = vadd.f32 %v1029_v30, %v2370_v11  ;;  %v1046_v20 = vadd.f32 %v1030_v36, %v2372_v12 }
 0x1d4   : > { %v2039_v31 = vpop.eup %2038  ;;  %v1001_v32 = vmul.f32 0.044715, %v952_v26  ;;  %v1002_v14 = vmul.f32 0.044715, %v971_v29  ;;  %v1061_v53 = vmul.f32 0.7978846, %v1045_v42 }
 0x1d5   : > { %v2041_v33 = vpop.eup %2040  ;;  %v1089_v35 = vadd.f32 1.0, %v2039_v31  ;;  %v1062_v57 = vmul.f32 0.7978846, %v1046_v20  ;;  %v985_v19 = vmul.f32 0.5, %v952_v26  ;;  %v986_v6 = vmul.f32 0.5, %v971_v29 }
 0x1d6   : > { %v1090_v38 = vadd.f32 1.0, %v2041_v33  ;;  %v1017_v39 = vmul.f32 %v1001_v32, %v952_v26  ;;  %v1018_v40 = vmul.f32 %v1002_v14, %v971_v29 }
 0x1d7   : > { %v2380_v41 = vmul.f32 %v1089_v35, %v977_v34  ;;  %v2109_v34 = vmov 256.0  }
 0x1d8   : > { %v2383_v43 = vmul.f32 %v1090_v38, %v978_v37  ;;  %v1033_v44 = vmul.f32 %v1017_v39, %v952_v26  ;;  %v1034_v45 = vmul.f32 %v1018_v40, %v971_v29 }
 0x1d9   : > { %v953_v46 = vpop.f32.mrf.mxu2  ;;  %v972_v47 = vpop.f32.mrf.mxu3 }
 0x1da   : > { %v954_v48 = vadd.f32 %v953_v46, %v733_v63  ;;  %v973_v49 = vadd.f32 %v972_v47, %v734_v0  ;;  %v1121_v50 = vadd.f32 %v2383_v43, %v2380_v41  ;;  %v1049_v51 = vadd.f32 %v1033_v44, %v952_v26 }
 0x1db   : > { %v1050_v52 = vadd.f32 %v1034_v45, %v971_v29 }
 0x1dc   : > { %v1005_v28 = vmul.f32 0.044715, %v954_v48  ;;  %v1006_v54 = vmul.f32 0.044715, %v973_v49  ;;  %1122 = vadd.xlane.f32.xlu1 %v1121_v50  ;;  %v1065_v55 = vmul.f32 0.7978846, %v1049_v51 }
 0x1dd   : > { %v1066_v56 = vmul.f32 0.7978846, %v1050_v52  ;;  %v989_v23 = vmul.f32 0.5, %v954_v48  ;;  %v990_v25 = vmul.f32 0.5, %v973_v49 }
 0x1de   : > { %2042 = vtanh.f32 %v1065_v55  ;;  %v1021_v58 = vmul.f32 %v1005_v28, %v954_v48  ;;  %v1022_v59 = vmul.f32 %v1006_v54, %v973_v49 }
 0x1df   : > { %2044 = vtanh.f32 %v1066_v56 }
 0x1e0   : > { %v1037_v60 = vmul.f32 %v1021_v58, %v954_v48  ;;  %v1038_v61 = vmul.f32 %v1022_v59, %v973_v49  ;;  %2046 = vtanh.f32 %v1061_v53 }
 0x1e1   : > { %2048 = vtanh.f32 %v1062_v57 }
 0x1e2   : > { %v1053_v63 = vadd.f32 %v1037_v60, %v954_v48  ;;  %v1054_v0 = vadd.f32 %v1038_v61, %v973_v49 }
 0x1e4   : > { %v2043_v1 = vpop.eup %2042  ;;  %v1069_v2 = vmul.f32 0.7978846, %v1053_v63  ;;  %v1070_v27 = vmul.f32 0.7978846, %v1054_v0 }
 0x1e5   : > { %v2045_v3 = vpop.eup %2044  ;;  %v1097_v4 = vadd.f32 1.0, %v2043_v1 }
 0x1e6   : > { %v2047_v5 = vpop.eup %2046  ;;  %v1098_v7 = vadd.f32 1.0, %v2045_v3  ;;  %2050 = vtanh.f32 %v1069_v2 }
 0x1e7   : > { %v2049_v8 = vpop.eup %2048  ;;  %v1113_v9 = vmul.f32 %v1097_v4, %v985_v19  ;;  %2052 = vtanh.f32 %v1070_v27  ;;  %v1093_v15 = vadd.f32 1.0, %v2047_v5 }
 0x1e8   : > { %v1114_v10 = vmul.f32 %v1098_v7, %v986_v6  ;;  %v1094_v16 = vadd.f32 1.0, %v2049_v8  ;;  %2054 = vrcp.f32 %v2109_v34 }
 0x1e9   : > { %v1109_v29 = vmul.f32 %v1093_v15, %v981_v18 }
 0x1ea   : > { %v1127_v13 = vadd.f32 %v1114_v10, %v1113_v9  ;;  %v1110_v30 = vmul.f32 %v1094_v16, %v982_v21 }
 0x1ec   : > { %v2051_v17 = vpop.eup %2050  ;;  %1128 = vadd.xlane.f32.xlu2 %v1127_v13  ;;  %v1124_v33 = vadd.f32 %v1110_v30, %v1109_v29 }
 0x1ed   : > { %v2053_v22 = vpop.eup %2052  ;;  %v1101_v24 = vadd.f32 1.0, %v2051_v17 }
 0x1ee   : > { %v1102_v26 = vadd.f32 1.0, %v2053_v22  ;;  %v2055_v35 = vpop.eup %2054 }
 0x1ef   : > { %v1117_v31 = vmul.f32 %v1101_v24, %v989_v23  ;;  %v1134_v36 = vmul.f32 256.0, %v2055_v35  ;;  %vm1138_vm13 = vweird.f32 %v2055_v35  ;;  %v1262_v24 = vld [vmem:[%s2236_s3] sm:$0xff] }
 0x1f0   : > { %v1118_v32 = vmul.f32 %v1102_v26, %v990_v25  ;;  %v2110_v25 = vmov 0  }
 0x1f1   : > { %v1135_v11 = vsub.f32 1.0, %v1134_v36  ;;  %2022 = vset.pattern.permute.xlu1 %v2110_v25  ;;  %2024 = vset.pattern.permute.xlu0 %v2110_v25 }
 0x1f2   : > { %v1130_v14 = vadd.f32 %v1118_v32, %v1117_v31  ;;  %2023 = vset.pattern.permute.xlu2 %v2110_v25 }
 0x1f3   : > { %v1136_v37 = vmul.f32 %v2055_v35, %v1135_v11 }
 0x1f4   : > { %1131 = vadd.xlane.f32.xlu0 %v1130_v14  ;;  %1125 = vadd.xlane.f32.xlu2 %v1124_v33 }
 0x1f5   : > { %v1137_v12 = vadd.f32 %v2055_v35, %v1136_v37 }
 0x1f7   : > { %v1139_v38 = vsel %vm1138_vm13, %v2055_v35, %v1137_v12 }
 0x24f   : > { %v1123_v39 = vpop.xlane.xlu1 %1122 }
 0x250   : > { %v1140_v40 = vmul.f32 %v1139_v38, %v1123_v39  ;;  %v1119_v39 = vld [vmem:[%s2220_s18] sm:$0x3] }
 0x252   : > { %v2391_v42 = vsub.f32 %v2380_v41, %v1140_v40  ;;  %v2394_v44 = vsub.f32 %v2383_v43, %v1140_v40 }
 0x254   : > { %v1152_v45 = vmul.f32 %v2391_v42, %v2391_v42  ;;  %v1153_v46 = vmul.f32 %v2394_v44, %v2394_v44 }
 0x256   : > { %v1160_v47 = vadd.f32 %v1153_v46, %v1152_v45 }
 0x258   : > { %1161 = vadd.xlane.f32.xlu2 %v1160_v47 }
 0x25f   : > { %v1129_v20 = vpop.xlane.xlu2 %1128 }
 0x260   : > { %v1142_v48 = vmul.f32 %v1139_v38, %v1129_v20 }
 0x262   : > { %v2400_v49 = vsub.f32 %v1113_v9, %v1142_v48  ;;  %v2402_v50 = vsub.f32 %v1114_v10, %v1142_v48 }
 0x264   : > { %v1156_v41 = vmul.f32 %v2400_v49, %v2400_v49  ;;  %v1157_v43 = vmul.f32 %v2402_v50, %v2402_v50 }
 0x266   : > { %v1166_v51 = vadd.f32 %v1157_v43, %v1156_v41  ;;  %v1229_v41 = vperm.slane %v1119_v39, 0  ;;  %v1230_v43 = vperm.slane %v1119_v39, 1 }
 0x267   : > { %v1132_v52 = vpop.xlane.xlu0 %1131  ;;  %v1126_v53 = vpop.xlane.xlu2 %1125 }
 0x268   : > { %v1143_v28 = vmul.f32 %v1139_v38, %v1132_v52  ;;  %v1141_v54 = vmul.f32 %v1139_v38, %v1126_v53  ;;  %1167 = vadd.xlane.f32.xlu0 %v1166_v51  ;;  %v1120_v52 = vld [vmem:[%s2225_s27] sm:$0x3] }
 0x26a   : > { %v2408_v55 = vsub.f32 %v1117_v31, %v1143_v28  ;;  %v2410_v56 = vsub.f32 %v1118_v32, %v1143_v28  ;;  %v2412_v57 = vsub.f32 %v1109_v29, %v1141_v54  ;;  %v2414_v58 = vsub.f32 %v1110_v30, %v1141_v54 }
 0x26c   : > { %v1158_v59 = vmul.f32 %v2408_v55, %v2408_v55  ;;  %v1159_v60 = vmul.f32 %v2410_v56, %v2410_v56  ;;  %v1154_v61 = vmul.f32 %v2412_v57, %v2412_v57  ;;  %v1155_v63 = vmul.f32 %v2414_v58, %v2414_v58 }
 0x26e   : > { %v1169_v0 = vadd.f32 %v1159_v60, %v1158_v59  ;;  %v1163_v1 = vadd.f32 %v1155_v63, %v1154_v61  ;;  %v1264_v59 = vld [vmem:[%s2236_s3 + $0x10] sm:$0xff]  ;;  %v1263_v60 = vld [vmem:[%s2236_s3 + $0x8] sm:$0xff] }
 0x270   : > { %1170 = vadd.xlane.f32.xlu1 %v1169_v0  ;;  %1164 = vadd.xlane.f32.xlu0 %v1163_v1  ;;  %v1986_v1 = vld [vmem:[%s2242_s5 + $0x38] sm:$0xff] }
 0x271   : > { %1273 = vperm.xlu2 %2023, %v1263_v60   ;;  %1485 = vmatpush.bf16.msrb.mxu2 %v1986_v1 }
 0x284   : > { %1278 = vperm.xlu0 %2024, %v1264_v59   ;;  %v1987_v59 = vld [vmem:[%s2242_s5 + $0x40] sm:$0xff] }
 0x289   : > { %1268 = vperm.xlu1 %2022, %v1262_v24  }
 0x2cb   : > { %v1162_v2 = vpop.xlane.xlu2 %1161 }
 0x2cc   : > { %v1172_v27 = vmul.f32 %v1162_v2, %v1139_v38  ;;  %v1994_v2 = vld [vmem:[%s2242_s5 + $0x78] sm:$0xff] }
 0x2cd   : > { %1504 = vmatpush.bf16.msrb.mxu3 %v1994_v2 }
 0x2ce   : > { %v1176_v3 = vadd.f32 1e-05, %v1172_v27 }
 0x2d0   : > { %2056 = vrsqrt.f32 %v1176_v3  ;;  %vm1186_vm2 = vweird.f32 %v1176_v3 }
 0x2d6   : > { %v2057_v5 = vpop.eup %2056 }
 0x2d7   : > { %v1181_v7 = vmul.f32 %v2057_v5, %v1176_v3  ;;  %vm1187_vm15 = vweird.f32 %v2057_v5 }
 0x2d8   : > { %vm1188_vm3 = vmor %vm1186_vm2, %vm1187_vm15 }
 0x2d9   : > { %v1182_v10 = vmul.f32 %v2057_v5, %v1181_v7 }
 0x2db   : > { %v1168_v19 = vpop.xlane.xlu0 %1167  ;;  %v1183_v22 = vmul.f32 0.5, %v1182_v10 }
 0x2dc   : > { %v1174_v4 = vmul.f32 %v1168_v19, %v1139_v38  ;;  %v1242_v19 = vperm.slane %v1120_v52, 0 }
 0x2dd   : > { %v1184_v29 = vsub.f32 1.5, %v1183_v22  ;;  %v1992_v22 = vld [vmem:[%s2242_s5 + $0x68] sm:$0xff] }
 0x2de   : > { %v1178_v6 = vadd.f32 1e-05, %v1174_v4  ;;  %v1243_v4 = vperm.slane %v1120_v52, 1 }
 0x2df   : > { %v1185_v34 = vmul.f32 %v2057_v5, %v1184_v29  ;;  %v1983_v29 = vld [vmem:[%s2242_s5 + $0x20] sm:$0xff] }
 0x2e0   : > { %2058 = vrsqrt.f32 %v1178_v6  ;;  %vm1206_vm0 = vweird.f32 %v1178_v6 }
 0x2e1   : > { %v1189_v40 = vsel %vm1188_vm3, %v2057_v5, %v1185_v34  ;;  %v1993_v5 = vld [vmem:[%s2242_s5 + $0x70] sm:$0xff]  ;;  %v908_v34 = vpop.f32.mrf.mxu0 }
 0x2e2   : > { %v1220_v53 = vmul.f32 %v1189_v40, %v2391_v42  ;;  %v1221_v54 = vmul.f32 %v1189_v40, %v2394_v44  ;;  %1505 = vmatpush.bf16.msrb.mxu3 %v1993_v5 }
 0x2e3   : > { %v1171_v8 = vpop.xlane.xlu1 %1170  ;;  %v1165_v9 = vpop.xlane.xlu0 %1164 }
 0x2e4   : > { %v1175_v13 = vmul.f32 %v1171_v8, %v1139_v38  ;;  %v1173_v15 = vmul.f32 %v1165_v9, %v1139_v38  ;;  %v1234_v7 = vmul.f32 %v1230_v43, %v1221_v54  ;;  %v1979_v54 = vld [vmem:[%s2242_s5] sm:$0xff] }
 0x2e6   : > { %v2059_v16 = vpop.eup %2058  ;;  %v1179_v17 = vadd.f32 1e-05, %v1175_v13  ;;  %v1177_v18 = vadd.f32 1e-05, %v1173_v15  ;;  %v1247_v24 = vadd.f32 %v1243_v4, %v1234_v7  ;;  %1506 = vmatpush.bf16.msrb.mxu3 %v1992_v22 }
 0x2e7   : > { %v1201_v21 = vmul.f32 %v2059_v16, %v1178_v6  ;;  %vm1207_vm14 = vweird.f32 %v2059_v16 }
 0x2e8   : > { %2060 = vrsqrt.f32 %v1179_v17  ;;  %vm1208_vm1 = vmor %vm1206_vm0, %vm1207_vm14  ;;  %vm1216_vm6 = vweird.f32 %v1179_v17  ;;  %vm1196_vm8 = vweird.f32 %v1177_v18 }
 0x2e9   : > { %v1202_v23 = vmul.f32 %v2059_v16, %v1201_v21  ;;  %2062 = vrsqrt.f32 %v1177_v18  ;;  %v1984_v21 = vld [vmem:[%s2242_s5 + $0x28] sm:$0xff] }
 0x2eb   : > { %v1203_v26 = vmul.f32 0.5, %v1202_v23 }
 0x2ed   : > { %v1204_v30 = vsub.f32 1.5, %v1203_v26 }
 0x2ee   : > { %v2061_v31 = vpop.eup %2060 }
 0x2ef   : > { %v2063_v32 = vpop.eup %2062  ;;  %v1205_v14 = vmul.f32 %v2059_v16, %v1204_v30  ;;  %v1211_v33 = vmul.f32 %v2061_v31, %v1179_v17  ;;  %vm1217_vm4 = vweird.f32 %v2061_v31  ;;  %v1991_v30 = vld [vmem:[%s2242_s5 + $0x60] sm:$0xff] }
 0x2f0   : > { %v1191_v35 = vmul.f32 %v2063_v32, %v1177_v18  ;;  %vm1197_vm5 = vweird.f32 %v2063_v32  ;;  %vm1218_vm7 = vmor %vm1216_vm6, %vm1217_vm4  ;;  %v1265_v18 = vld [vmem:[%s2236_s3 + $0x18] sm:$0xff]  ;;  %1507 = vmatpush.bf16.msrb.mxu3 %v1991_v30 }
 0x2f1   : > { %v1212_v36 = vmul.f32 %v2061_v31, %v1211_v33  ;;  %v1209_v37 = vsel %vm1208_vm1, %v2059_v16, %v1205_v14  ;;  %vm1198_vm9 = vmor %vm1196_vm8, %vm1197_vm5  ;;  %1283 = vperm.xlu2 %2023, %v1265_v18   ;;  %v1990_v14 = vld [vmem:[%s2242_s5 + $0x58] sm:$0xff]  ;;  %v1978_v33 = vld [vmem:[%s2230_s12 + $0x8] sm:$0xff] }
 0x2f2   : > { %v1192_v11 = vmul.f32 %v2063_v32, %v1191_v35  ;;  %v1224_v46 = vmul.f32 %v1209_v37, %v2400_v49  ;;  %v1225_v47 = vmul.f32 %v1209_v37, %v2402_v50  ;;  %v927_v35 = vpop.f32.mrf.mxu1 }
 0x2f3   : > { %v1213_v12 = vmul.f32 0.5, %v1212_v36  ;;  %v910_v36 = vpop.f32.mrf.mxu0 }
 0x2f4   : > { %v1193_v38 = vmul.f32 0.5, %v1192_v11  ;;  %v1237_v28 = vmul.f32 %v1229_v41, %v1224_v46  ;;  %v1238_v50 = vmul.f32 %v1230_v43, %v1225_v47  ;;  %1508 = vmatpush.bf16.msrb.mxu3 %v1990_v14  ;;  %v731_v11 = vperm.slane %v2366_v62, 0  ;;  %v1989_v46 = vld [vmem:[%s2242_s5 + $0x50] sm:$0xff] }
 0x2f5   : > { %v1214_v45 = vsub.f32 1.5, %v1213_v12  ;;  %v732_v12 = vperm.slane %v2366_v62, 1 }
 0x2f6   : > { %v1194_v20 = vsub.f32 1.5, %v1193_v38  ;;  %v1250_v9 = vadd.f32 %v1242_v19, %v1237_v28  ;;  %v2452_v38 = vadd.f32 %v908_v34, %v731_v11  ;;  %v2456_v40 = vadd.f32 %v910_v36, %v731_v11 }
 0x2f7   : > { %v1215_v48 = vmul.f32 %v2061_v31, %v1214_v45  ;;  %v2454_v39 = vadd.f32 %v927_v35, %v732_v12  ;;  %v1981_v45 = vld [vmem:[%s2242_s5 + $0x10] sm:$0xff] }
 0x2f8   : > { %v1195_v51 = vmul.f32 %v2063_v32, %v1194_v20  ;;  %v991_v20 = vmul.f32 0.044715, %v2452_v38  ;;  %1509 = vmatpush.bf16.msrb.mxu3 %v1989_v46 }
 0x2f9   : > { %v1219_v49 = vsel %vm1218_vm7, %v2061_v31, %v1215_v48  ;;  %v1977_v31 = vld [vmem:[%s2230_s12] sm:$0xff]  ;;  %v992_v62 = vmul.f32 0.044715, %v2454_v39 }
 0x2fa   : > { %v1226_v61 = vmul.f32 %v1219_v49, %v2408_v55  ;;  %v1227_v63 = vmul.f32 %v1219_v49, %v2410_v56  ;;  %v1199_v0 = vsel %vm1198_vm9, %v2063_v32, %v1195_v51  ;;  %v1985_v55 = vld [vmem:[%s2242_s5 + $0x30] sm:$0xff]  ;;  %v1233_v56 = vmul.f32 %v1229_v41, %v1220_v53  ;;  %v1982_v32 = vld [vmem:[%s2242_s5 + $0x18] sm:$0xff]  ;;  %v929_v37 = vpop.f32.mrf.mxu1 }
 0x2fb   : > { %v1222_v42 = vmul.f32 %v1199_v0, %v2412_v57  ;;  %v1223_v27 = vmul.f32 %v1199_v0, %v2414_v58  ;;  %v1251_v57 = vadd.f32 %v1243_v4, %v1238_v50  ;;  %1486 = vmatpush.bf16.msrb.mxu2 %v1985_v55  ;;  %v2460_v47 = vadd.f32 %v929_v37, %v732_v12  ;;  %v913_v48 = vpop.f32.mrf.mxu0  ;;  %v1269_v36 = vpop.permute.xlu1 %1268 }
 0x2fc   : > { %v1239_v3 = vmul.f32 %v1229_v41, %v1226_v61  ;;  %v1240_v44 = vmul.f32 %v1230_v43, %v1227_v63  ;;  %v1246_v23 = vadd.f32 %v1242_v19, %v1233_v56  ;;  %v995_v51 = vmul.f32 0.044715, %v2456_v40 }
 0x2fd   : > { %v1235_v6 = vmul.f32 %v1229_v41, %v1222_v42  ;;  %v1236_v8 = vmul.f32 %v1230_v43, %v1223_v27  ;;  %v1980_v41 = vld [vmem:[%s2242_s5 + $0x8] sm:$0xff]  ;;  %v996_v53 = vmul.f32 0.044715, %v2460_v47  ;;  %v1007_v49 = vmul.f32 %v991_v20, %v2452_v38 }
 0x2fe   : > { %v1252_v10 = vadd.f32 %v1242_v19, %v1239_v3  ;;  %v1253_v13 = vadd.f32 %v1243_v4, %v1240_v44  ;;  %v1988_v43 = vld [vmem:[%s2242_s5 + $0x48] sm:$0xff]  ;;  %v1008_v28 = vmul.f32 %v992_v62, %v2454_v39  ;;  %v1011_v50 = vmul.f32 %v995_v51, %v2456_v40 }
 0x2ff   : > { %v1248_v58 = vadd.f32 %v1242_v19, %v1235_v6  ;;  %v1249_v17 = vadd.f32 %v1243_v4, %v1236_v8  ;;  %1487 = vmatpush.bf16.msrb.mxu2 %v1984_v21  ;;  %1510 = vmatpush.bf16.msrb.mxu3 %v1988_v43  ;;  %v1012_v60 = vmul.f32 %v996_v53, %v2460_v47  ;;  %v979_v43 = vmul.f32 0.5, %v2456_v40  ;;  %v1274_v53 = vpop.permute.xlu2 %1273 }
 0x300   : > { %v1260_v15 = vpack.c.bf16 %v1252_v10, %v1250_v9  ;;  %v1261_v16 = vpack.c.bf16 %v1253_v13, %v1251_v57  ;;  %v1023_v61 = vmul.f32 %v1007_v49, %v2452_v38  ;;  %v1024_v63 = vmul.f32 %v1008_v28, %v2454_v39 }
 0x301   : > { %v1258_v25 = vpack.c.bf16 %v1248_v58, %v1246_v23  ;;  %v1259_v26 = vpack.c.bf16 %v1249_v17, %v1247_v24  ;;  %v2476_v0 = vadd.f32 %v913_v48, %v731_v11  ;;  %v1027_v2 = vmul.f32 %v1011_v50, %v2456_v40 }
 0x302   : > { %1309 = vmatpush.bf16.msrb.mxu0 %v1260_v15  ;;  %1328 = vmatpush.bf16.msrb.mxu1 %v1261_v16  ;;  %v932_v52 = vpop.f32.mrf.mxu1  ;;  %v1028_v27 = vmul.f32 %v1012_v60, %v2460_v47  ;;  %v1039_v19 = vadd.f32 %v1023_v61, %v2452_v38  ;;  %v1040_v4 = vadd.f32 %v1024_v63, %v2454_v39  ;;  %v975_v48 = vmul.f32 0.5, %v2452_v38 }
 0x303   : > { %1488 = vmatpush.bf16.msrb.mxu2 %v1983_v29  ;;  %1511 = vmatpush.bf16.msrb.mxu3 %v1987_v59  ;;  %v915_v1 = vpop.f32.mrf.mxu0  ;;  %v2479_v42 = vadd.f32 %v932_v52, %v732_v12  ;;  %v999_v55 = vmul.f32 0.044715, %v2476_v0  ;;  %v1043_v5 = vadd.f32 %v1027_v2, %v2456_v40  ;;  %v980_v49 = vmul.f32 0.5, %v2460_v47 }
 0x304   : > { %v2483_v44 = vadd.f32 %v915_v1, %v731_v11  ;;  %v1044_v7 = vadd.f32 %v1028_v27, %v2460_v47  ;;  %v1055_v8 = vmul.f32 0.7978846, %v1039_v19  ;;  %v1056_v10 = vmul.f32 0.7978846, %v1040_v4 }
 0x305   : > { %v1000_v56 = vmul.f32 0.044715, %v2479_v42  ;;  %v1015_v57 = vmul.f32 %v999_v55, %v2476_v0  ;;  %v1059_v13 = vmul.f32 0.7978846, %v1043_v5 }
 0x306   : > { %1310 = vmatpush.bf16.msrb.mxu0 %v1258_v25  ;;  %1329 = vmatpush.bf16.msrb.mxu1 %v1259_v26  ;;  %v1003_v9 = vmul.f32 0.044715, %v2483_v44  ;;  %v1060_v16 = vmul.f32 0.7978846, %v1044_v7  ;;  %2064 = vtanh.f32 %v1055_v8  ;;  %v1279_v8 = vpop.permute.xlu0 %1278 }
 0x307   : > { %1489 = vmatpush.bf16.msrb.mxu2 %v1982_v32  ;;  %v1016_v58 = vmul.f32 %v1000_v56, %v2479_v42  ;;  %2066 = vtanh.f32 %v1056_v10  ;;  %v1031_v18 = vmul.f32 %v1015_v57, %v2476_v0 }
 0x308   : > { %v1019_v17 = vmul.f32 %v1003_v9, %v2483_v44  ;;  %2068 = vtanh.f32 %v1059_v13 }
 0x309   : > { %1868 = vmatmul.msk.bf16.vlgmr.msrb.gmra.mxu0 %vm1296_vm10, %v1977_v31  ;;  %1870 = vmatmul.msk.bf16.vlgmr.msrb.gmra.mxu1 %vm1296_vm10, %v1977_v31  ;;  %2070 = vtanh.f32 %v1060_v16  ;;  %v1032_v22 = vmul.f32 %v1016_v58, %v2479_v42  ;;  %v1047_v25 = vadd.f32 %v1031_v18, %v2476_v0  ;;  %v983_v58 = vmul.f32 0.5, %v2476_v0 }
 0x30a   : > { %v934_v3 = vpop.f32.mrf.mxu1  ;;  %v1035_v23 = vmul.f32 %v1019_v17, %v2483_v44 }
 0x30b   : > { %1490 = vmatpush.bf16.msrb.mxu2 %v1981_v45  ;;  %v2489_v6 = vadd.f32 %v934_v3, %v732_v12  ;;  %v1048_v31 = vadd.f32 %v1032_v22, %v2479_v42  ;;  %v1063_v35 = vmul.f32 0.7978846, %v1047_v25 }
 0x30c   : > { %v2065_v24 = vpop.eup %2064  ;;  %v1051_v34 = vadd.f32 %v1035_v23, %v2483_v44 }
 0x30d   : > { %v1004_v15 = vmul.f32 0.044715, %v2489_v6  ;;  %v2067_v26 = vpop.eup %2066  ;;  %v1087_v11 = vadd.f32 1.0, %v2065_v24  ;;  %v1064_v12 = vmul.f32 0.7978846, %v1048_v31  ;;  %2072 = vtanh.f32 %v1063_v35 }
 0x30e   : > { %v2069_v14 = vpop.eup %2068  ;;  %v1088_v37 = vadd.f32 1.0, %v2067_v26  ;;  %v1067_v62 = vmul.f32 0.7978846, %v1051_v34  ;;  %v988_v22 = vmul.f32 0.5, %v2489_v6 }
 0x30f   : > { %1491 = vmatpush.bf16.msrb.mxu2 %v1980_v41  ;;  %v1020_v21 = vmul.f32 %v1004_v15, %v2489_v6  ;;  %v1091_v46 = vadd.f32 1.0, %v2069_v14  ;;  %v976_v41 = vmul.f32 0.5, %v2454_v39  ;;  %v1103_v28 = vmul.f32 %v1087_v11, %v975_v48 }
 0x310   : > { %2074 = vtanh.f32 %v1064_v12  ;;  %v984_v15 = vmul.f32 0.5, %v2479_v42  ;;  %v2080_v12 = vld [vmem:[#allocation2 + $0x10] sm:$0xff] }
 0x311   : > { %v1036_v32 = vmul.f32 %v1020_v21, %v2489_v6  ;;  %v1104_v50 = vmul.f32 %v1088_v37, %v976_v41  ;;  %v1107_v61 = vmul.f32 %v1091_v46, %v979_v43  ;;  %2076 = vtanh.f32 %v1067_v62  ;;  %v2081_v43 = vld [vmem:[#allocation2] sm:$0xff] }
 0x312   : > { %v987_v21 = vmul.f32 0.5, %v2483_v44  ;;  %v2027_v44 = vld [vmem:[%s568_s26] ss:$0 sm:$0xff] }
 0x313   : > { %1492 = vmatpush.bf16.msrb.mxu2 %v1979_v54  ;;  %v1052_v45 = vadd.f32 %v1036_v32, %v2489_v6 }
 0x315   : > { %v1068_v60 = vmul.f32 0.7978846, %v1052_v45 }
 0x317   : > { %2078 = vtanh.f32 %v1068_v60 }
 0x319   : > { %1869 = vmatmul.msk.bf16.gmra.mxu0 %vm1296_vm10, %v1978_v33  ;;  %1871 = vmatmul.msk.bf16.gmra.mxu1 %vm1296_vm10, %v1978_v33  ;;  %v2071_v33 = vpop.eup %2070 }
 0x31a   : > { %v1092_v20 = vadd.f32 1.0, %v2071_v33  ;;  %v2073_v3 = vpop.eup %2072 }
 0x31b   : > { %v2075_v4 = vpop.eup %2074  ;;  %v1095_v9 = vadd.f32 1.0, %v2073_v3 }
 0x31c   : > { %v1108_v38 = vmul.f32 %v1092_v20, %v980_v49  ;;  %v2077_v55 = vpop.eup %2076  ;;  %v1096_v10 = vadd.f32 1.0, %v2075_v4 }
 0x31d   : > { %v2079_v7 = vpop.eup %2078  ;;  %v1099_v57 = vadd.f32 1.0, %v2077_v55  ;;  %v1111_v23 = vmul.f32 %v1095_v9, %v983_v58 }
 0x31e   : > { %v1100_v13 = vadd.f32 1.0, %v2079_v7  ;;  %v1112_v24 = vmul.f32 %v1096_v10, %v984_v15 }
 0x320   : > { %v1116_v31 = vmul.f32 %v1100_v13, %v988_v22 }
 0x34b   : > { %v1284_v18 = vpop.permute.xlu2 %1283 }
 0x386   : > { %v1312_v29 = vpop.f32.mrf.mxu0  ;;  %v1331_v30 = vpop.f32.mrf.mxu1 }
 0x387   : > { %v1313_v51 = vadd.f32 %v1312_v29, %v1269_v36  ;;  %v1332_v52 = vadd.f32 %v1331_v30, %v1269_v36  ;;  %v1115_v29 = vmul.f32 %v1099_v57, %v987_v21 }
 0x389   : > { %v1341_v39 = vmul.f32 %v1313_v51, %v1103_v28  ;;  %v1342_v40 = vmul.f32 %v1332_v52, %v1104_v50  ;;  %v2082_v28 = vld [vmem:[#allocation2 + $0x18] sm:$0xff] }
 0x38e   : > { %v1314_v54 = vpop.f32.mrf.mxu0  ;;  %v1333_v59 = vpop.f32.mrf.mxu1 }
 0x38f   : > { %v1315_v63 = vadd.f32 %v1314_v54, %v1274_v53  ;;  %v1334_v1 = vadd.f32 %v1333_v59, %v1274_v53 }
 0x391   : > { %v1343_v2 = vmul.f32 %v1315_v63, %v1107_v61  ;;  %v1344_v27 = vmul.f32 %v1334_v1, %v1108_v38  ;;  %v2083_v63 = vld [vmem:[#allocation2 + $0x8] sm:$0xff] }
 0x393   : > { %v1349_v19 = vpack.c.bf16 %v1343_v2, %v1341_v39  ;;  %v1350_v47 = vpack.c.bf16 %v1344_v27, %v1342_v40 }
 0x395   : > { %1493 = vmatmul.bf16.vlgmr.msrb.gmra.mxu2 %v1349_v19  ;;  %1512 = vmatmul.bf16.vlgmr.msrb.gmra.mxu3 %v1350_v47 }
 0x396   : > { %v1317_v5 = vpop.f32.mrf.mxu0  ;;  %v1336_v56 = vpop.f32.mrf.mxu1 }
 0x397   : > { %v1318_v16 = vadd.f32 %v1317_v5, %v1279_v8  ;;  %v1337_v17 = vadd.f32 %v1336_v56, %v1279_v8 }
 0x399   : > { %v1345_v14 = vmul.f32 %v1318_v16, %v1111_v23  ;;  %v1346_v0 = vmul.f32 %v1337_v17, %v1112_v24 }
 0x39e   : > { %v1319_v25 = vpop.f32.mrf.mxu0  ;;  %v1338_v26 = vpop.f32.mrf.mxu1 }
 0x39f   : > { %v1320_v30 = vadd.f32 %v1319_v25, %v1284_v18  ;;  %v1339_v32 = vadd.f32 %v1338_v26, %v1284_v18 }
 0x3a1   : > { %v1347_v33 = vmul.f32 %v1320_v30, %v1115_v29  ;;  %v1348_v42 = vmul.f32 %v1339_v32, %v1116_v31 }
 0x3a3   : > { %v1351_v34 = vpack.c.bf16 %v1347_v33, %v1345_v14  ;;  %v1352_v35 = vpack.c.bf16 %v1348_v42, %v1346_v0 }
 0x3a5   : > { %1498 = vmatmul.bf16.gmra.mxu2 %v1351_v34  ;;  %1517 = vmatmul.bf16.gmra.mxu3 %v1352_v35 }
 0x418   : > { %v1494_v6 = vpop.f32.mrf.mxu2  ;;  %v1513_v36 = vpop.f32.mrf.mxu3 }
 0x419   : > { %v1495_v11 = vadd.f32 %v2027_v44, %v1494_v6 }
 0x41b   : > { %v1514_v37 = vadd.f32 %v1513_v36, %v1495_v11 }
 0x41d   : > { %v1523_v45 = vadd.f32 %v2080_v12, %v1514_v37 }
 0x41f   : > { %1527 = vst [vmem:[#allocation2 + $0x10] sm:$0xff] %v1523_v45 }
 0x420   : > { %v1496_v46 = vpop.f32.mrf.mxu2  ;;  %v1515_v20 = vpop.f32.mrf.mxu3 }
 0x421   : > { %v1497_v48 = vadd.f32 %v2027_v44, %v1496_v46 }
 0x423   : > { %v1516_v41 = vadd.f32 %v1515_v20, %v1497_v48 }
 0x425   : > { %v1524_v62 = vadd.f32 %v2081_v43, %v1516_v41 }
 0x427   : > { %1528 = vst [vmem:[#allocation2] sm:$0xff] %v1524_v62 }
 0x428   : > { %v1499_v51 = vpop.f32.mrf.mxu2  ;;  %v1518_v52 = vpop.f32.mrf.mxu3 }
 0x429   : > { %v1500_v53 = vadd.f32 %v2027_v44, %v1499_v51 }
 0x42b   : > { %v1519_v49 = vadd.f32 %v1518_v52, %v1500_v53 }
 0x42d   : > { %v1525_v50 = vadd.f32 %v2082_v28, %v1519_v49 }
 0x42f   : > { %1529 = vst [vmem:[#allocation2 + $0x18] sm:$0xff] %v1525_v50 }
 0x430   : > { %v1501_v54 = vpop.f32.mrf.mxu2  ;;  %v1520_v60 = vpop.f32.mrf.mxu3 }
 0x431   : > { %v1502_v59 = vadd.f32 %v2027_v44, %v1501_v54 }
 0x433   : > { %v1521_v61 = vadd.f32 %v1520_v60, %v1502_v59  ;;  %1534 = sbr.rel (%p1936_p6) target bundleno = 1084 (0x43c), region = 72 }
 0x435   : > { %v1526_v38 = vadd.f32 %v2083_v63, %v1521_v61 }
 0x437   : > { %1530 = vst [vmem:[#allocation2 + $0x8] sm:$0xff] %v1526_v38 }
 0x438   : > { %1535 = vst [vmem:[%s2552_s11] sm:$0xff] %v1523_v45 }
 0x439   : > { %1536 = vst [vmem:[%s2552_s11 + $0x8] sm:$0xff] %v1524_v62 }
 0x43a   : > { %1537 = vst [vmem:[%s2552_s11 + $0x10] sm:$0xff] %v1525_v50 }
 0x43b   : > { %1538 = vst [vmem:[%s2552_s11 + $0x18] sm:$0xff] %v1526_v38 }
 0x43c PF: > { %s21_s19 = sadd.s32 1, %s2106_s19   ;;  %s2564_s17 = sld [smem:[#allocation3_spill]] }
 0x43d   : > { %p18_p7 = scmp.ge.s32.totalorder %s21_s19, 4   ;;  %s2565_s18 = sld [smem:[#allocation4_spill]] }
 0x43f   :  { %20 = sbr.rel (!%p18_p7) target bundleno = 4 (0x4), region = 132 }

</bundles_post_ra>
